<compile_context>
chip_gen: v6e
topology: v6e:2x2x1
jax: 0.10.0
libtpu: 0.0.40
codegen_flags: <defaults>
</compile_context>

<pallas_src>
import functools

import jax
import jax.numpy as jnp
import numpy as np
from jax.experimental import pallas as pl
from jax.experimental.pallas import tpu as pltpu


# ----------------------------- Pallas kernel --------------------------------


def _layernorm(x, gamma, beta, eps=1e-5):
    mu = jnp.mean(x, axis=-1, keepdims=True)
    var = jnp.mean((x - mu) ** 2, axis=-1, keepdims=True)
    return (x - mu) * jax.lax.rsqrt(var + eps) * gamma + beta


def encoder_kernel(
    x_ref,            # (R, D)  f32   embedded tokens for this row tile
    wqkv_ref,         # (1, D, 3D) bf16  pre-transposed fused QKV weight (Q cols pre-scaled)
    bqkv_ref,         # (1, 3, D)  f32   (row 0 pre-scaled by 1/sqrt(dh))
    wo_ref,           # (1, D, D)  bf16  pre-transposed out-proj weight
    bo_ref,           # (1, 1, D)  f32
    g1_ref, be1_ref,  # (1, 1, D)  f32
    w1_ref,           # (1, D, 4D) bf16  pre-transposed c_fc weight
    b1_ref,           # (1, 1, 4D) f32
    w2_ref,           # (1, 4D, D) bf16  pre-transposed c_proj weight
    b2_ref,           # (1, 1, D)  f32
    g2_ref, be2_ref,  # (1, 1, D)  f32
    o_ref,            # (R, D)  f32  output tile == layer-resident VMEM accumulator
    *,
    num_heads: int,
    seq: int,
):
    layer = pl.program_id(1)

    # Load the embedded tokens only once; afterwards the activation lives in
    # the output tile itself (block index constant over the layer axis, so it
    # stays resident in VMEM and is written back to HBM only once at the end).
    @pl.when(layer == 0)
    def _():
        o_ref[...] = x_ref[...]

    x = o_ref[...]                                    # (R, D) f32
    R, D = x.shape
    B = R // seq
    dh = D // num_heads

    # ---------------- attention branch: LN1 -> fused QKV -> MHA -------------
    h = _layernorm(x, g1_ref[0], be1_ref[0])          # f32
    qkv = jnp.dot(h.astype(jnp.bfloat16), wqkv_ref[0],
                  preferred_element_type=jnp.float32)  # (R, 3D) f32
    b3 = bqkv_ref[0]                                  # (3, D) sublane-indexed bias
    q = qkv[:, :D] + b3[0:1]                          # 1/sqrt(dh) folded at pack time
    k = qkv[:, D:2 * D] + b3[1:2]
    v = qkv[:, 2 * D:] + b3[2:3]

    # (R, D) -> (B, S, D): clean 8-aligned split of the row (sublane) axis.
    q3 = q.reshape(B, seq, D).astype(jnp.bfloat16)
    k3 = k.reshape(B, seq, D).astype(jnp.bfloat16)
    v3 = v.reshape(B, seq, D).astype(jnp.bfloat16)

    # Per-head attention; assemble all heads into one (R, D) slab (lane-axis
    # concat, XLU/VPU work) and run ONE full-width K=D out-projection matmul.
    # TODO(synk): at production head counts switch to lax.fori_loop(unroll=k).
    ctx_heads = []
    for hh in range(num_heads):
        sl = slice(hh * dh, (hh + 1) * dh)
        s = jnp.einsum("bqd,bkd->bqk", q3[:, :, sl], k3[:, :, sl],
                       preferred_element_type=jnp.float32)      # (B, S, S) f32
        s = s - jnp.max(s, axis=-1, keepdims=True)
        p = jnp.exp(s)
        p = p * pl.reciprocal(jnp.sum(p, axis=-1, keepdims=True), approx=True)
        ctx = jnp.einsum("bqk,bkd->bqd", p.astype(jnp.bfloat16), v3[:, :, sl],
                         preferred_element_type=jnp.float32)    # (B, S, dh) f32
        ctx_heads.append(ctx)
    ctx_all = jnp.concatenate(ctx_heads, axis=-1).reshape(R, D)  # (R, D) f32

    attn = jnp.dot(ctx_all.astype(jnp.bfloat16), wo_ref[0],
                   preferred_element_type=jnp.float32) + bo_ref[0]  # (R, D)

    y = x + attn                                      # inner residual #1

    # ---------------- MLP branch: LN2 -> c_fc -> QuickGELU -> c_proj --------
    h2 = _layernorm(y, g2_ref[0], be2_ref[0])
    f = jnp.dot(h2.astype(jnp.bfloat16), w1_ref[0],
                preferred_element_type=jnp.float32) + b1_ref[0]  # (R, 4D)
    f = f * jax.nn.sigmoid(1.702 * f)                 # QuickGELU, f32
    m = jnp.dot(f.astype(jnp.bfloat16), w2_ref[0],
                preferred_element_type=jnp.float32) + b2_ref[0]  # (R, D)

    # inner residual #2 plus the outer SolutionEncoder residual: x + block(x)
    o_ref[...] = x + (y + m)


# ------------------------------ host wrapper ---------------------------------


def pack_params(params, num_heads):
    """Stack per-layer weights on a leading layer axis, pre-transpose them for
    `h @ W` layout, fold 1/sqrt(dh) into the Q columns (and bias row 0), and
    cast the MXU-side weights to bf16 (once, on the host)."""
    layers = params["layers"]
    D = params["embedding"].shape[1]
    dh = D // num_heads
    scale = 1.0 / float(dh) ** 0.5

    def stack(fn):
        return jnp.stack([fn(lp) for lp in layers], axis=0)

    def scaled_bqkv(lp):
        b = lp["bqkv"].reshape(3, D)
        return b * jnp.array([[scale], [1.0], [1.0]], jnp.float32)

    return {
        "wqkv": stack(lambda lp: jnp.concatenate(
            [lp["wq"].T * scale, lp["wk"].T, lp["wv"].T], axis=1)).astype(jnp.bfloat16),
        "bqkv": stack(scaled_bqkv),
        "wo":   stack(lambda lp: lp["wo"].T).astype(jnp.bfloat16),
        "bo":   stack(lambda lp: lp["bo"]),
        "g1":   stack(lambda lp: lp["g1"]),
        "be1":  stack(lambda lp: lp["be1"]),
        "w1":   stack(lambda lp: lp["w1"].T).astype(jnp.bfloat16),
        "b1":   stack(lambda lp: lp["b1"]),
        "w2":   stack(lambda lp: lp["w2"].T).astype(jnp.bfloat16),
        "b2":   stack(lambda lp: lp["b2"]),
        "g2":   stack(lambda lp: lp["g2"]),
        "be2":  stack(lambda lp: lp["be2"]),
    }


def solution_encoder_forward(ids, embedding, packed, num_heads, *, num_row_tiles=1):
    """ids: (S, B) int32 token ids. Returns (S, B, D) float32 (PyTorch layout).

    num_row_tiles: leading "parallel" grid axis.  Cap at the TensorCore count
    (1 on v5e/v6e, 2 on v7x) and grow the batch folded into R instead — each
    extra row tile re-streams all L layers' weights from HBM.
    """
    S, B = ids.shape
    D = embedding.shape[1]
    L = packed["wqkv"].shape[0]
    R = B * S
    assert R % num_row_tiles == 0
    tile_rows = R // num_row_tiles
    assert tile_rows % S == 0, "each row tile must hold whole sequences"

    # Embedding gather is plain-JAX glue; fold batch into matmul rows.
    x = jnp.take(embedding, ids, axis=0)              # (S, B, D)
    x = jnp.transpose(x, (1, 0, 2)).reshape(R, D)     # (B*S, D)

    kernel = functools.partial(encoder_kernel, num_heads=num_heads, seq=S)

    def wspec(arr):
        nd = arr.ndim
        return pl.BlockSpec((1,) + arr.shape[1:],
                            lambda t, l, _nd=nd: (l,) + (0,) * (_nd - 1))

    in_specs = [
        pl.BlockSpec((tile_rows, D), lambda t, l: (t, 0)),    # x
        wspec(packed["wqkv"]),
        wspec(packed["bqkv"]),
        wspec(packed["wo"]),
        wspec(packed["bo"]),
        wspec(packed["g1"]),
        wspec(packed["be1"]),
        wspec(packed["w1"]),
        wspec(packed["b1"]),
        wspec(packed["w2"]),
        wspec(packed["b2"]),
        wspec(packed["g2"]),
        wspec(packed["be2"]),
    ]

    out = pl.pallas_call(
        kernel,
        out_shape=jax.ShapeDtypeStruct((R, D), jnp.float32),
        grid=(num_row_tiles, L),                       # rows parallel, layers serial
        in_specs=in_specs,
        # Output block index is constant over the layer axis -> the output
        # tile is the layer-resident accumulator; HBM writeback happens once.
        out_specs=pl.BlockSpec((tile_rows, D), lambda t, l: (t, 0)),
        compiler_params=pltpu.CompilerParams(
            dimension_semantics=("parallel", "arbitrary")),
        # NOTE: at production D set vmem_limit_bytes explicitly; on v7x also
        # tile the 4*D hidden dim of w1/w2 (extra "arbitrary" grid axis) so
        # double-buffered layer weights (48*D^2 bytes) fit its 64 MiB VMEM.
    )(
        x,
        packed["wqkv"], packed["bqkv"], packed["wo"], packed["bo"],
        packed["g1"], packed["be1"],
        packed["w1"], packed["b1"], packed["w2"], packed["b2"],
        packed["g2"], packed["be2"],
    )
    return out.reshape(B, S, D).transpose(1, 0, 2)     # back to (S, B, D)


# --------------------- deterministic synthetic parameters --------------------


def init_params(key, emb_num, D, layers):
    H = 4 * D
    keys = jax.random.split(key, 1 + layers)
    params = {"embedding": 0.02 * jax.random.normal(keys[0], (emb_num, D), jnp.float32)}
    layer_params = []
    for li in range(layers):
        ks = jax.random.split(keys[1 + li], 16)
        s = 0.05
        lp = {
            "wq": s * jax.random.normal(ks[0], (D, D), jnp.float32),
            "wk": s * jax.random.normal(ks[1], (D, D), jnp.float32),
            "wv": s * jax.random.normal(ks[2], (D, D), jnp.float32),
            "bqkv": s * jax.random.normal(ks[3], (1, 3 * D), jnp.float32),
            "wo": s * jax.random.normal(ks[4], (D, D), jnp.float32),
            "bo": s * jax.random.normal(ks[5], (1, D), jnp.float32),
            "g1": jnp.ones((1, D), jnp.float32),
            "be1": jnp.zeros((1, D), jnp.float32),
            "w1": s * jax.random.normal(ks[6], (H, D), jnp.float32),
            "b1": s * jax.random.normal(ks[7], (1, H), jnp.float32),
            "w2": s * jax.random.normal(ks[8], (D, H), jnp.float32),
            "b2": s * jax.random.normal(ks[9], (1, D), jnp.float32),
            "g2": jnp.ones((1, D), jnp.float32),
            "be2": jnp.zeros((1, D), jnp.float32),
        }
        layer_params.append(lp)
    params["layers"] = layer_params
    return params


# -------------------------- pure-JAX f32 reference ---------------------------


def _ref_block(x, lp, num_heads):
    D = x.shape[-1]
    dh = D // num_heads

    def ln(v, g, b):
        mu = jnp.mean(v, axis=-1, keepdims=True)
        var = jnp.mean((v - mu) ** 2, axis=-1, keepdims=True)
        return (v - mu) / jnp.sqrt(var + 1e-5) * g[0] + b[0]

    h = ln(x, lp["g1"], lp["be1"])
    q = h @ lp["wq"].T + lp["bqkv"][0, :D]
    k = h @ lp["wk"].T + lp["bqkv"][0, D:2 * D]
    v = h @ lp["wv"].T + lp["bqkv"][0, 2 * D:]

    def split(t):
        B, S, _ = t.shape
        return t.reshape(B, S, num_heads, dh).transpose(0, 2, 1, 3)

    qh, kh, vh = split(q), split(k), split(v)
    s = jnp.einsum("bhqd,bhkd->bhqk", qh, kh) / jnp.sqrt(dh)
    p = jax.nn.softmax(s, axis=-1)
    a = jnp.einsum("bhqk,bhkd->bhqd", p, vh)
    a = a.transpose(0, 2, 1, 3).reshape(x.shape)
    y = x + (a @ lp["wo"].T + lp["bo"][0])
    h2 = ln(y, lp["g2"], lp["be2"])
    f = h2 @ lp["w1"].T + lp["b1"][0]
    f = f * jax.nn.sigmoid(1.702 * f)
    blk = y + (f @ lp["w2"].T + lp["b2"][0])
    return x + blk


def solution_encoder_ref(ids, params, num_heads):
    x = jnp.take(params["embedding"], ids, axis=0)
    x = jnp.transpose(x, (1, 0, 2))
    for lp in params["layers"]:
        x = _ref_block(x, lp, num_heads)
    return jnp.transpose(x, (1, 0, 2))


# ---------------------------------- main --------------------------------------


if __name__ == "__main__":
    emb_num, attn_dim, num_heads, layers = 10, 32, 4, 2
    seq, batch = 8, 2

    key = jax.random.PRNGKey(0)
    k_param, k_ids = jax.random.split(key)
    params = init_params(k_param, emb_num, attn_dim, layers)
    packed = pack_params(params, num_heads)            # stack/transpose/scale-fold/bf16 once
    ids = jax.random.randint(k_ids, (seq, batch), 0, emb_num, dtype=jnp.int32)

    out = solution_encoder_forward(ids, params["embedding"], packed, num_heads)
    out = jax.block_until_ready(out)

    ref = jax.block_until_ready(solution_encoder_ref(ids, params, num_heads))
    # Tolerance vs the f32 reference: bf16 inputs into every MXU matmul (f32
    # accumulation), the 1/sqrt(dh) scale folded into bf16 Q weights, and the
    # approximate EUP reciprocal for the softmax denominator; expected max abs
    # error is O(1e-2) over 2 LayerNorm-renormalised layers.  Re-validate (or
    # switch to exact reciprocal) at production layer counts.
    np.testing.assert_allclose(np.asarray(out), np.asarray(ref), atol=5e-2, rtol=5e-2)

    print("KERNEL_OK")
</pallas_src>

<mosaic_0001>
module attributes {stable_mosaic.version = 11 : i64} {
  func.func @encoder_kernel(%arg0: i32, %arg1: i32, %arg2: memref<16x32xf32, #tpu.memory_space<vmem>>, %arg3: memref<1x32x96xbf16, #tpu.memory_space<vmem>>, %arg4: memref<1x3x32xf32, #tpu.memory_space<vmem>>, %arg5: memref<1x32x32xbf16, #tpu.memory_space<vmem>>, %arg6: memref<1x1x32xf32, #tpu.memory_space<vmem>>, %arg7: memref<1x1x32xf32, #tpu.memory_space<vmem>>, %arg8: memref<1x1x32xf32, #tpu.memory_space<vmem>>, %arg9: memref<1x32x128xbf16, #tpu.memory_space<vmem>>, %arg10: memref<1x1x128xf32, #tpu.memory_space<vmem>>, %arg11: memref<1x128x32xbf16, #tpu.memory_space<vmem>>, %arg12: memref<1x1x32xf32, #tpu.memory_space<vmem>>, %arg13: memref<1x1x32xf32, #tpu.memory_space<vmem>>, %arg14: memref<1x1x32xf32, #tpu.memory_space<vmem>>, %arg15: memref<16x32xf32, #tpu.memory_space<vmem>>) attributes {dimension_semantics = [#tpu.dimension_semantics<parallel>, #tpu.dimension_semantics<arbitrary>], iteration_bounds = array<i64: 1, 2>, scalar_prefetch = 0 : i64, scratch_operands = 0 : i64, tpu.core_type = #tpu.core_type<tc>, window_params = [{transform_indices = @transform_0, window_bounds = array<i64: 16, 32>}, {transform_indices = @transform_1, window_bounds = array<i64: 1, 32, 96>}, {transform_indices = @transform_2, window_bounds = array<i64: 1, 3, 32>}, {transform_indices = @transform_3, window_bounds = array<i64: 1, 32, 32>}, {transform_indices = @transform_4, window_bounds = array<i64: 1, 1, 32>}, {transform_indices = @transform_5, window_bounds = array<i64: 1, 1, 32>}, {transform_indices = @transform_6, window_bounds = array<i64: 1, 1, 32>}, {transform_indices = @transform_7, window_bounds = array<i64: 1, 32, 128>}, {transform_indices = @transform_8, window_bounds = array<i64: 1, 1, 128>}, {transform_indices = @transform_9, window_bounds = array<i64: 1, 128, 32>}, {transform_indices = @transform_10, window_bounds = array<i64: 1, 1, 32>}, {transform_indices = @transform_11, window_bounds = array<i64: 1, 1, 32>}, {transform_indices = @transform_12, window_bounds = array<i64: 1, 1, 32>}, {transform_indices = @transform_13, window_bounds = array<i64: 16, 32>}]} {
    %c0_i32 = arith.constant 0 : i32
    %0 = arith.cmpi eq, %arg1, %c0_i32 : i32
    %1 = arith.extui %0 : i1 to i32
    %c0_i32_0 = arith.constant 0 : i32
    %2 = arith.cmpi ne, %1, %c0_i32_0 : i32
    scf.if %2 {
      %c0_71 = arith.constant 0 : index
      %c0_72 = arith.constant 0 : index
      %182 = vector.load %arg2[%c0_71, %c0_72] : memref<16x32xf32, #tpu.memory_space<vmem>>, vector<16x32xf32>
      %c0_73 = arith.constant 0 : index
      %c0_74 = arith.constant 0 : index
      %183 = vector.load %arg15[%c0_73, %c0_74] : memref<16x32xf32, #tpu.memory_space<vmem>>, vector<16x32xf32>
      tpu.vector_store %arg15[%c0_73, %c0_74], %182 {strides = array<i32>} : memref<16x32xf32, #tpu.memory_space<vmem>>, vector<16x32xf32>,
    } else {
    }
    %c0 = arith.constant 0 : index
    %c0_1 = arith.constant 0 : index
    %3 = vector.load %arg15[%c0, %c0_1] : memref<16x32xf32, #tpu.memory_space<vmem>>, vector<16x32xf32>
    %c0_2 = arith.constant 0 : index
    %c0_3 = arith.constant 0 : index
    %c0_4 = arith.constant 0 : index
    %4 = vector.load %arg7[%c0_2, %c0_3, %c0_4] : memref<1x1x32xf32, #tpu.memory_space<vmem>>, vector<1x1x32xf32>
    %5 = vector.shape_cast %4 : vector<1x1x32xf32> to vector<1x32xf32>
    %c0_5 = arith.constant 0 : index
    %c0_6 = arith.constant 0 : index
    %c0_7 = arith.constant 0 : index
    %6 = vector.load %arg8[%c0_5, %c0_6, %c0_7] : memref<1x1x32xf32, #tpu.memory_space<vmem>>, vector<1x1x32xf32>
    %7 = vector.shape_cast %6 : vector<1x1x32xf32> to vector<1x32xf32>
    %cst = arith.constant dense<0.000000e+00> : vector<16xf32>
    %8 = vector.multi_reduction <add>, %3, %cst [1] : vector<16x32xf32> to vector<16xf32>
    %9 = vector.shape_cast %8 : vector<16xf32> to vector<16x1xf32>
    %cst_8 = arith.constant 3.200000e+01 : f32
    %10 = vector.broadcast %cst_8 : f32 to vector<16x1xf32>
    %11 = arith.divf %9, %10 : vector<16x1xf32>
    %12 = vector.broadcast %11 : vector<16x1xf32> to vector<16x32xf32>
    %13 = arith.subf %3, %12 : vector<16x32xf32>
    %14 = arith.mulf %13, %13 : vector<16x32xf32>
    %cst_9 = arith.constant dense<0.000000e+00> : vector<16xf32>
    %15 = vector.multi_reduction <add>, %14, %cst_9 [1] : vector<16x32xf32> to vector<16xf32>
    %16 = vector.shape_cast %15 : vector<16xf32> to vector<16x1xf32>
    %cst_10 = arith.constant 3.200000e+01 : f32
    %17 = vector.broadcast %cst_10 : f32 to vector<16x1xf32>
    %18 = arith.divf %16, %17 : vector<16x1xf32>
    %19 = vector.broadcast %11 : vector<16x1xf32> to vector<16x32xf32>
    %20 = arith.subf %3, %19 : vector<16x32xf32>
    %cst_11 = arith.constant 9.99999974E-6 : f32
    %21 = vector.broadcast %cst_11 : f32 to vector<16x1xf32>
    %22 = arith.addf %18, %21 : vector<16x1xf32>
    %23 = math.rsqrt %22 : vector<16x1xf32>
    %24 = vector.broadcast %23 : vector<16x1xf32> to vector<16x32xf32>
    %25 = arith.mulf %20, %24 : vector<16x32xf32>
    %26 = vector.broadcast %5 : vector<1x32xf32> to vector<16x32xf32>
    %27 = arith.mulf %25, %26 : vector<16x32xf32>
    %28 = vector.broadcast %7 : vector<1x32xf32> to vector<16x32xf32>
    %29 = arith.addf %27, %28 : vector<16x32xf32>
    %30 = arith.truncf %29 : vector<16x32xf32> to vector<16x32xbf16>
    %c0_12 = arith.constant 0 : index
    %c0_13 = arith.constant 0 : index
    %c0_14 = arith.constant 0 : index
    %31 = vector.load %arg3[%c0_12, %c0_13, %c0_14] : memref<1x32x96xbf16, #tpu.memory_space<vmem>>, vector<1x32x96xbf16>
    %32 = vector.shape_cast %31 : vector<1x32x96xbf16> to vector<32x96xbf16>
    %cst_15 = arith.constant dense<0.000000e+00> : vector<16x96xf32>
    %33 = tpu.matmul %30, %32, %cst_15 {dimension_numbers = #tpu.dot_dimension_numbers<[1], [0], [0], [1], [0, 0, 1, 1], [], []>} : vector<16x32xbf16>, vector<32x96xbf16>, vector<16x96xf32> -> vector<16x96xf32>
    %c0_16 = arith.constant 0 : index
    %c0_17 = arith.constant 0 : index
    %c0_18 = arith.constant 0 : index
    %34 = vector.load %arg4[%c0_16, %c0_17, %c0_18] : memref<1x3x32xf32, #tpu.memory_space<vmem>>, vector<1x3x32xf32>
    %35 = vector.shape_cast %34 : vector<1x3x32xf32> to vector<3x32xf32>
    %36 = vector.extract_strided_slice %33 {offsets = [0, 0], sizes = [16, 32], strides = [1, 1]} : vector<16x96xf32> to vector<16x32xf32>
    %37 = vector.extract_strided_slice %35 {offsets = [0, 0], sizes = [1, 32], strides = [1, 1]} : vector<3x32xf32> to vector<1x32xf32>
    %38 = vector.broadcast %37 : vector<1x32xf32> to vector<16x32xf32>
    %39 = arith.addf %36, %38 : vector<16x32xf32>
    %40 = vector.extract_strided_slice %33 {offsets = [0, 32], sizes = [16, 32], strides = [1, 1]} : vector<16x96xf32> to vector<16x32xf32>
    %41 = vector.extract_strided_slice %35 {offsets = [1, 0], sizes = [1, 32], strides = [1, 1]} : vector<3x32xf32> to vector<1x32xf32>
    %42 = vector.broadcast %41 : vector<1x32xf32> to vector<16x32xf32>
    %43 = arith.addf %40, %42 : vector<16x32xf32>
    %44 = vector.extract_strided_slice %33 {offsets = [0, 64], sizes = [16, 32], strides = [1, 1]} : vector<16x96xf32> to vector<16x32xf32>
    %45 = vector.extract_strided_slice %35 {offsets = [2, 0], sizes = [1, 32], strides = [1, 1]} : vector<3x32xf32> to vector<1x32xf32>
    %46 = vector.broadcast %45 : vector<1x32xf32> to vector<16x32xf32>
    %47 = arith.addf %44, %46 : vector<16x32xf32>
    %48 = vector.shape_cast %39 : vector<16x32xf32> to vector<2x8x32xf32>
    %49 = arith.truncf %48 : vector<2x8x32xf32> to vector<2x8x32xbf16>
    %50 = vector.shape_cast %43 : vector<16x32xf32> to vector<2x8x32xf32>
    %51 = arith.truncf %50 : vector<2x8x32xf32> to vector<2x8x32xbf16>
    %52 = vector.shape_cast %47 : vector<16x32xf32> to vector<2x8x32xf32>
    %53 = arith.truncf %52 : vector<2x8x32xf32> to vector<2x8x32xbf16>
    %54 = vector.extract_strided_slice %49 {offsets = [0, 0, 0], sizes = [2, 8, 8], strides = [1, 1, 1]} : vector<2x8x32xbf16> to vector<2x8x8xbf16>
    %55 = vector.extract_strided_slice %51 {offsets = [0, 0, 0], sizes = [2, 8, 8], strides = [1, 1, 1]} : vector<2x8x32xbf16> to vector<2x8x8xbf16>
    "tpu.trace_start"() <{level = 10 : i32, message = "bqd,bkd->bqk"}> : () -> ()
    %cst_19 = arith.constant dense<0.000000e+00> : vector<2x8x8xf32>
    %56 = tpu.matmul %54, %55, %cst_19 {dimension_numbers = #tpu.dot_dimension_numbers<[2], [2], [1], [1], [0, 0, 0, 1, 1, 1], [0], [0]>} : vector<2x8x8xbf16>, vector<2x8x8xbf16>, vector<2x8x8xf32> -> vector<2x8x8xf32>
    "tpu.trace_stop"() : () -> ()
    %cst_20 = arith.constant dense<0xFF800000> : vector<2x8xf32>
    %57 = vector.multi_reduction <maximumf>, %56, %cst_20 [2] : vector<2x8x8xf32> to vector<2x8xf32>
    %58 = vector.shape_cast %57 : vector<2x8xf32> to vector<2x8x1xf32>
    %59 = vector.broadcast %58 : vector<2x8x1xf32> to vector<2x8x8xf32>
    %60 = arith.subf %56, %59 : vector<2x8x8xf32>
    %61 = math.exp %60 : vector<2x8x8xf32>
    %cst_21 = arith.constant dense<0.000000e+00> : vector<2x8xf32>
    %62 = vector.multi_reduction <add>, %61, %cst_21 [2] : vector<2x8x8xf32> to vector<2x8xf32>
    %63 = vector.shape_cast %62 : vector<2x8xf32> to vector<2x8x1xf32>
    %64 = tpu.reciprocal %63 {approx = true} : vector<2x8x1xf32> -> vector<2x8x1xf32>
    %65 = vector.broadcast %64 : vector<2x8x1xf32> to vector<2x8x8xf32>
    %66 = arith.mulf %61, %65 : vector<2x8x8xf32>
    %67 = arith.truncf %66 : vector<2x8x8xf32> to vector<2x8x8xbf16>
    %68 = vector.extract_strided_slice %53 {offsets = [0, 0, 0], sizes = [2, 8, 8], strides = [1, 1, 1]} : vector<2x8x32xbf16> to vector<2x8x8xbf16>
    "tpu.trace_start"() <{level = 10 : i32, message = "bqk,bkd->bqd"}> : () -> ()
    %cst_22 = arith.constant dense<0.000000e+00> : vector<2x8x8xf32>
    %69 = tpu.matmul %67, %68, %cst_22 {dimension_numbers = #tpu.dot_dimension_numbers<[2], [1], [1], [2], [0, 0, 0, 1, 1, 2], [0], [0]>} : vector<2x8x8xbf16>, vector<2x8x8xbf16>, vector<2x8x8xf32> -> vector<2x8x8xf32>
    "tpu.trace_stop"() : () -> ()
    %70 = vector.extract_strided_slice %49 {offsets = [0, 0, 8], sizes = [2, 8, 8], strides = [1, 1, 1]} : vector<2x8x32xbf16> to vector<2x8x8xbf16>
    %71 = vector.extract_strided_slice %51 {offsets = [0, 0, 8], sizes = [2, 8, 8], strides = [1, 1, 1]} : vector<2x8x32xbf16> to vector<2x8x8xbf16>
    "tpu.trace_start"() <{level = 10 : i32, message = "bqd,bkd->bqk"}> : () -> ()
    %cst_23 = arith.constant dense<0.000000e+00> : vector<2x8x8xf32>
    %72 = tpu.matmul %70, %71, %cst_23 {dimension_numbers = #tpu.dot_dimension_numbers<[2], [2], [1], [1], [0, 0, 0, 1, 1, 1], [0], [0]>} : vector<2x8x8xbf16>, vector<2x8x8xbf16>, vector<2x8x8xf32> -> vector<2x8x8xf32>
    "tpu.trace_stop"() : () -> ()
    %cst_24 = arith.constant dense<0xFF800000> : vector<2x8xf32>
    %73 = vector.multi_reduction <maximumf>, %72, %cst_24 [2] : vector<2x8x8xf32> to vector<2x8xf32>
    %74 = vector.shape_cast %73 : vector<2x8xf32> to vector<2x8x1xf32>
    %75 = vector.broadcast %74 : vector<2x8x1xf32> to vector<2x8x8xf32>
    %76 = arith.subf %72, %75 : vector<2x8x8xf32>
    %77 = math.exp %76 : vector<2x8x8xf32>
    %cst_25 = arith.constant dense<0.000000e+00> : vector<2x8xf32>
    %78 = vector.multi_reduction <add>, %77, %cst_25 [2] : vector<2x8x8xf32> to vector<2x8xf32>
    %79 = vector.shape_cast %78 : vector<2x8xf32> to vector<2x8x1xf32>
    %80 = tpu.reciprocal %79 {approx = true} : vector<2x8x1xf32> -> vector<2x8x1xf32>
    %81 = vector.broadcast %80 : vector<2x8x1xf32> to vector<2x8x8xf32>
    %82 = arith.mulf %77, %81 : vector<2x8x8xf32>
    %83 = arith.truncf %82 : vector<2x8x8xf32> to vector<2x8x8xbf16>
    %84 = vector.extract_strided_slice %53 {offsets = [0, 0, 8], sizes = [2, 8, 8], strides = [1, 1, 1]} : vector<2x8x32xbf16> to vector<2x8x8xbf16>
    "tpu.trace_start"() <{level = 10 : i32, message = "bqk,bkd->bqd"}> : () -> ()
    %cst_26 = arith.constant dense<0.000000e+00> : vector<2x8x8xf32>
    %85 = tpu.matmul %83, %84, %cst_26 {dimension_numbers = #tpu.dot_dimension_numbers<[2], [1], [1], [2], [0, 0, 0, 1, 1, 2], [0], [0]>} : vector<2x8x8xbf16>, vector<2x8x8xbf16>, vector<2x8x8xf32> -> vector<2x8x8xf32>
    "tpu.trace_stop"() : () -> ()
    %86 = vector.extract_strided_slice %49 {offsets = [0, 0, 16], sizes = [2, 8, 8], strides = [1, 1, 1]} : vector<2x8x32xbf16> to vector<2x8x8xbf16>
    %87 = vector.extract_strided_slice %51 {offsets = [0, 0, 16], sizes = [2, 8, 8], strides = [1, 1, 1]} : vector<2x8x32xbf16> to vector<2x8x8xbf16>
    "tpu.trace_start"() <{level = 10 : i32, message = "bqd,bkd->bqk"}> : () -> ()
    %cst_27 = arith.constant dense<0.000000e+00> : vector<2x8x8xf32>
    %88 = tpu.matmul %86, %87, %cst_27 {dimension_numbers = #tpu.dot_dimension_numbers<[2], [2], [1], [1], [0, 0, 0, 1, 1, 1], [0], [0]>} : vector<2x8x8xbf16>, vector<2x8x8xbf16>, vector<2x8x8xf32> -> vector<2x8x8xf32>
    "tpu.trace_stop"() : () -> ()
    %cst_28 = arith.constant dense<0xFF800000> : vector<2x8xf32>
    %89 = vector.multi_reduction <maximumf>, %88, %cst_28 [2] : vector<2x8x8xf32> to vector<2x8xf32>
    %90 = vector.shape_cast %89 : vector<2x8xf32> to vector<2x8x1xf32>
    %91 = vector.broadcast %90 : vector<2x8x1xf32> to vector<2x8x8xf32>
    %92 = arith.subf %88, %91 : vector<2x8x8xf32>
    %93 = math.exp %92 : vector<2x8x8xf32>
    %cst_29 = arith.constant dense<0.000000e+00> : vector<2x8xf32>
    %94 = vector.multi_reduction <add>, %93, %cst_29 [2] : vector<2x8x8xf32> to vector<2x8xf32>
    %95 = vector.shape_cast %94 : vector<2x8xf32> to vector<2x8x1xf32>
    %96 = tpu.reciprocal %95 {approx = true} : vector<2x8x1xf32> -> vector<2x8x1xf32>
    %97 = vector.broadcast %96 : vector<2x8x1xf32> to vector<2x8x8xf32>
    %98 = arith.mulf %93, %97 : vector<2x8x8xf32>
    %99 = arith.truncf %98 : vector<2x8x8xf32> to vector<2x8x8xbf16>
    %100 = vector.extract_strided_slice %53 {offsets = [0, 0, 16], sizes = [2, 8, 8], strides = [1, 1, 1]} : vector<2x8x32xbf16> to vector<2x8x8xbf16>
    "tpu.trace_start"() <{level = 10 : i32, message = "bqk,bkd->bqd"}> : () -> ()
    %cst_30 = arith.constant dense<0.000000e+00> : vector<2x8x8xf32>
    %101 = tpu.matmul %99, %100, %cst_30 {dimension_numbers = #tpu.dot_dimension_numbers<[2], [1], [1], [2], [0, 0, 0, 1, 1, 2], [0], [0]>} : vector<2x8x8xbf16>, vector<2x8x8xbf16>, vector<2x8x8xf32> -> vector<2x8x8xf32>
    "tpu.trace_stop"() : () -> ()
    %102 = vector.extract_strided_slice %49 {offsets = [0, 0, 24], sizes = [2, 8, 8], strides = [1, 1, 1]} : vector<2x8x32xbf16> to vector<2x8x8xbf16>
    %103 = vector.extract_strided_slice %51 {offsets = [0, 0, 24], sizes = [2, 8, 8], strides = [1, 1, 1]} : vector<2x8x32xbf16> to vector<2x8x8xbf16>
    "tpu.trace_start"() <{level = 10 : i32, message = "bqd,bkd->bqk"}> : () -> ()
    %cst_31 = arith.constant dense<0.000000e+00> : vector<2x8x8xf32>
    %104 = tpu.matmul %102, %103, %cst_31 {dimension_numbers = #tpu.dot_dimension_numbers<[2], [2], [1], [1], [0, 0, 0, 1, 1, 1], [0], [0]>} : vector<2x8x8xbf16>, vector<2x8x8xbf16>, vector<2x8x8xf32> -> vector<2x8x8xf32>
    "tpu.trace_stop"() : () -> ()
    %cst_32 = arith.constant dense<0xFF800000> : vector<2x8xf32>
    %105 = vector.multi_reduction <maximumf>, %104, %cst_32 [2] : vector<2x8x8xf32> to vector<2x8xf32>
    %106 = vector.shape_cast %105 : vector<2x8xf32> to vector<2x8x1xf32>
    %107 = vector.broadcast %106 : vector<2x8x1xf32> to vector<2x8x8xf32>
    %108 = arith.subf %104, %107 : vector<2x8x8xf32>
    %109 = math.exp %108 : vector<2x8x8xf32>
    %cst_33 = arith.constant dense<0.000000e+00> : vector<2x8xf32>
    %110 = vector.multi_reduction <add>, %109, %cst_33 [2] : vector<2x8x8xf32> to vector<2x8xf32>
    %111 = vector.shape_cast %110 : vector<2x8xf32> to vector<2x8x1xf32>
    %112 = tpu.reciprocal %111 {approx = true} : vector<2x8x1xf32> -> vector<2x8x1xf32>
    %113 = vector.broadcast %112 : vector<2x8x1xf32> to vector<2x8x8xf32>
    %114 = arith.mulf %109, %113 : vector<2x8x8xf32>
    %115 = arith.truncf %114 : vector<2x8x8xf32> to vector<2x8x8xbf16>
    %116 = vector.extract_strided_slice %53 {offsets = [0, 0, 24], sizes = [2, 8, 8], strides = [1, 1, 1]} : vector<2x8x32xbf16> to vector<2x8x8xbf16>
    "tpu.trace_start"() <{level = 10 : i32, message = "bqk,bkd->bqd"}> : () -> ()
    %cst_34 = arith.constant dense<0.000000e+00> : vector<2x8x8xf32>
    %117 = tpu.matmul %115, %116, %cst_34 {dimension_numbers = #tpu.dot_dimension_numbers<[2], [1], [1], [2], [0, 0, 0, 1, 1, 2], [0], [0]>} : vector<2x8x8xbf16>, vector<2x8x8xbf16>, vector<2x8x8xf32> -> vector<2x8x8xf32>
    "tpu.trace_stop"() : () -> ()
    %118 = tpu.concatenate %69, %85, %101, %117 in 2 : vector<2x8x8xf32>, vector<2x8x8xf32>, vector<2x8x8xf32>, vector<2x8x8xf32> -> vector<2x8x32xf32>
    %119 = vector.shape_cast %118 : vector<2x8x32xf32> to vector<16x32xf32>
    %120 = arith.truncf %119 : vector<16x32xf32> to vector<16x32xbf16>
    %c0_35 = arith.constant 0 : index
    %c0_36 = arith.constant 0 : index
    %c0_37 = arith.constant 0 : index
    %121 = vector.load %arg5[%c0_35, %c0_36, %c0_37] : memref<1x32x32xbf16, #tpu.memory_space<vmem>>, vector<1x32x32xbf16>
    %122 = vector.shape_cast %121 : vector<1x32x32xbf16> to vector<32x32xbf16>
    %cst_38 = arith.constant dense<0.000000e+00> : vector<16x32xf32>
    %123 = tpu.matmul %120, %122, %cst_38 {dimension_numbers = #tpu.dot_dimension_numbers<[1], [0], [0], [1], [0, 0, 1, 1], [], []>} : vector<16x32xbf16>, vector<32x32xbf16>, vector<16x32xf32> -> vector<16x32xf32>
    %c0_39 = arith.constant 0 : index
    %c0_40 = arith.constant 0 : index
    %c0_41 = arith.constant 0 : index
    %124 = vector.load %arg6[%c0_39, %c0_40, %c0_41] : memref<1x1x32xf32, #tpu.memory_space<vmem>>, vector<1x1x32xf32>
    %125 = vector.shape_cast %124 : vector<1x1x32xf32> to vector<1x32xf32>
    %126 = vector.broadcast %125 : vector<1x32xf32> to vector<16x32xf32>
    %127 = arith.addf %123, %126 : vector<16x32xf32>
    %128 = arith.addf %3, %127 : vector<16x32xf32>
    %c0_42 = arith.constant 0 : index
    %c0_43 = arith.constant 0 : index
    %c0_44 = arith.constant 0 : index
    %129 = vector.load %arg13[%c0_42, %c0_43, %c0_44] : memref<1x1x32xf32, #tpu.memory_space<vmem>>, vector<1x1x32xf32>
    %130 = vector.shape_cast %129 : vector<1x1x32xf32> to vector<1x32xf32>
    %c0_45 = arith.constant 0 : index
    %c0_46 = arith.constant 0 : index
    %c0_47 = arith.constant 0 : index
    %131 = vector.load %arg14[%c0_45, %c0_46, %c0_47] : memref<1x1x32xf32, #tpu.memory_space<vmem>>, vector<1x1x32xf32>
    %132 = vector.shape_cast %131 : vector<1x1x32xf32> to vector<1x32xf32>
    %cst_48 = arith.constant dense<0.000000e+00> : vector<16xf32>
    %133 = vector.multi_reduction <add>, %128, %cst_48 [1] : vector<16x32xf32> to vector<16xf32>
    %134 = vector.shape_cast %133 : vector<16xf32> to vector<16x1xf32>
    %cst_49 = arith.constant 3.200000e+01 : f32
    %135 = vector.broadcast %cst_49 : f32 to vector<16x1xf32>
    %136 = arith.divf %134, %135 : vector<16x1xf32>
    %137 = vector.broadcast %136 : vector<16x1xf32> to vector<16x32xf32>
    %138 = arith.subf %128, %137 : vector<16x32xf32>
    %139 = arith.mulf %138, %138 : vector<16x32xf32>
    %cst_50 = arith.constant dense<0.000000e+00> : vector<16xf32>
    %140 = vector.multi_reduction <add>, %139, %cst_50 [1] : vector<16x32xf32> to vector<16xf32>
    %141 = vector.shape_cast %140 : vector<16xf32> to vector<16x1xf32>
    %cst_51 = arith.constant 3.200000e+01 : f32
    %142 = vector.broadcast %cst_51 : f32 to vector<16x1xf32>
    %143 = arith.divf %141, %142 : vector<16x1xf32>
    %144 = vector.broadcast %136 : vector<16x1xf32> to vector<16x32xf32>
    %145 = arith.subf %128, %144 : vector<16x32xf32>
    %cst_52 = arith.constant 9.99999974E-6 : f32
    %146 = vector.broadcast %cst_52 : f32 to vector<16x1xf32>
    %147 = arith.addf %143, %146 : vector<16x1xf32>
    %148 = math.rsqrt %147 : vector<16x1xf32>
    %149 = vector.broadcast %148 : vector<16x1xf32> to vector<16x32xf32>
    %150 = arith.mulf %145, %149 : vector<16x32xf32>
    %151 = vector.broadcast %130 : vector<1x32xf32> to vector<16x32xf32>
    %152 = arith.mulf %150, %151 : vector<16x32xf32>
    %153 = vector.broadcast %132 : vector<1x32xf32> to vector<16x32xf32>
    %154 = arith.addf %152, %153 : vector<16x32xf32>
    %155 = arith.truncf %154 : vector<16x32xf32> to vector<16x32xbf16>
    %c0_53 = arith.constant 0 : index
    %c0_54 = arith.constant 0 : index
    %c0_55 = arith.constant 0 : index
    %156 = vector.load %arg9[%c0_53, %c0_54, %c0_55] : memref<1x32x128xbf16, #tpu.memory_space<vmem>>, vector<1x32x128xbf16>
    %157 = vector.shape_cast %156 : vector<1x32x128xbf16> to vector<32x128xbf16>
    %cst_56 = arith.constant dense<0.000000e+00> : vector<16x128xf32>
    %158 = tpu.matmul %155, %157, %cst_56 {dimension_numbers = #tpu.dot_dimension_numbers<[1], [0], [0], [1], [0, 0, 1, 1], [], []>} : vector<16x32xbf16>, vector<32x128xbf16>, vector<16x128xf32> -> vector<16x128xf32>
    %c0_57 = arith.constant 0 : index
    %c0_58 = arith.constant 0 : index
    %c0_59 = arith.constant 0 : index
    %159 = vector.load %arg10[%c0_57, %c0_58, %c0_59] : memref<1x1x128xf32, #tpu.memory_space<vmem>>, vector<1x1x128xf32>
    %160 = vector.shape_cast %159 : vector<1x1x128xf32> to vector<1x128xf32>
    %161 = vector.broadcast %160 : vector<1x128xf32> to vector<16x128xf32>
    %162 = arith.addf %158, %161 : vector<16x128xf32>
    %cst_60 = arith.constant 1.702000e+00 : f32
    %163 = vector.broadcast %cst_60 : f32 to vector<16x128xf32>
    %164 = arith.mulf %163, %162 : vector<16x128xf32>
    %165 = arith.negf %164 : vector<16x128xf32>
    %166 = math.exp %165 : vector<16x128xf32>
    %cst_61 = arith.constant 1.000000e+00 : f32
    %167 = vector.broadcast %cst_61 : f32 to vector<16x128xf32>
    %168 = arith.addf %167, %166 : vector<16x128xf32>
    %169 = arith.divf %167, %168 : vector<16x128xf32>
    %170 = arith.mulf %162, %169 : vector<16x128xf32>
    %171 = arith.truncf %170 : vector<16x128xf32> to vector<16x128xbf16>
    %c0_62 = arith.constant 0 : index
    %c0_63 = arith.constant 0 : index
    %c0_64 = arith.constant 0 : index
    %172 = vector.load %arg11[%c0_62, %c0_63, %c0_64] : memref<1x128x32xbf16, #tpu.memory_space<vmem>>, vector<1x128x32xbf16>
    %173 = vector.shape_cast %172 : vector<1x128x32xbf16> to vector<128x32xbf16>
    %cst_65 = arith.constant dense<0.000000e+00> : vector<16x32xf32>
    %174 = tpu.matmul %171, %173, %cst_65 {dimension_numbers = #tpu.dot_dimension_numbers<[1], [0], [0], [1], [0, 0, 1, 1], [], []>} : vector<16x128xbf16>, vector<128x32xbf16>, vector<16x32xf32> -> vector<16x32xf32>
    %c0_66 = arith.constant 0 : index
    %c0_67 = arith.constant 0 : index
    %c0_68 = arith.constant 0 : index
    %175 = vector.load %arg12[%c0_66, %c0_67, %c0_68] : memref<1x1x32xf32, #tpu.memory_space<vmem>>, vector<1x1x32xf32>
    %176 = vector.shape_cast %175 : vector<1x1x32xf32> to vector<1x32xf32>
    %177 = vector.broadcast %176 : vector<1x32xf32> to vector<16x32xf32>
    %178 = arith.addf %174, %177 : vector<16x32xf32>
    %179 = arith.addf %128, %178 : vector<16x32xf32>
    %180 = arith.addf %3, %179 : vector<16x32xf32>
    %c0_69 = arith.constant 0 : index
    %c0_70 = arith.constant 0 : index
    %181 = vector.load %arg15[%c0_69, %c0_70] : memref<16x32xf32, #tpu.memory_space<vmem>>, vector<16x32xf32>
    tpu.vector_store %arg15[%c0_69, %c0_70], %180 {strides = array<i32>} : memref<16x32xf32, #tpu.memory_space<vmem>>, vector<16x32xf32>,
    return
  }
  func.func @transform_0(%arg0: i32, %arg1: i32) -> (i32, i32) {
    %c0_i32 = arith.constant 0 : i32
    %c0_i32_0 = arith.constant 0 : i32
    return %arg0, %c0_i32 : i32, i32
  }
  func.func @transform_1(%arg0: i32, %arg1: i32) -> (i32, i32, i32) {
    %c0_i32 = arith.constant 0 : i32
    %c0_i32_0 = arith.constant 0 : i32
    %c0_i32_1 = arith.constant 0 : i32
    return %arg1, %c0_i32, %c0_i32_0 : i32, i32, i32
  }
  func.func @transform_2(%arg0: i32, %arg1: i32) -> (i32, i32, i32) {
    %c0_i32 = arith.constant 0 : i32
    %c0_i32_0 = arith.constant 0 : i32
    %c0_i32_1 = arith.constant 0 : i32
    return %arg1, %c0_i32, %c0_i32_0 : i32, i32, i32
  }
  func.func @transform_3(%arg0: i32, %arg1: i32) -> (i32, i32, i32) {
    %c0_i32 = arith.constant 0 : i32
    %c0_i32_0 = arith.constant 0 : i32
    %c0_i32_1 = arith.constant 0 : i32
    return %arg1, %c0_i32, %c0_i32_0 : i32, i32, i32
  }
  func.func @transform_4(%arg0: i32, %arg1: i32) -> (i32, i32, i32) {
    %c0_i32 = arith.constant 0 : i32
    %c0_i32_0 = arith.constant 0 : i32
    %c0_i32_1 = arith.constant 0 : i32
    return %arg1, %c0_i32, %c0_i32_0 : i32, i32, i32
  }
  func.func @transform_5(%arg0: i32, %arg1: i32) -> (i32, i32, i32) {
    %c0_i32 = arith.constant 0 : i32
    %c0_i32_0 = arith.constant 0 : i32
    %c0_i32_1 = arith.constant 0 : i32
    return %arg1, %c0_i32, %c0_i32_0 : i32, i32, i32
  }
  func.func @transform_6(%arg0: i32, %arg1: i32) -> (i32, i32, i32) {
    %c0_i32 = arith.constant 0 : i32
    %c0_i32_0 = arith.constant 0 : i32
    %c0_i32_1 = arith.constant 0 : i32
    return %arg1, %c0_i32, %c0_i32_0 : i32, i32, i32
  }
  func.func @transform_7(%arg0: i32, %arg1: i32) -> (i32, i32, i32) {
    %c0_i32 = arith.constant 0 : i32
    %c0_i32_0 = arith.constant 0 : i32
    %c0_i32_1 = arith.constant 0 : i32
    return %arg1, %c0_i32, %c0_i32_0 : i32, i32, i32
  }
  func.func @transform_8(%arg0: i32, %arg1: i32) -> (i32, i32, i32) {
    %c0_i32 = arith.constant 0 : i32
    %c0_i32_0 = arith.constant 0 : i32
    %c0_i32_1 = arith.constant 0 : i32
    return %arg1, %c0_i32, %c0_i32_0 : i32, i32, i32
  }
  func.func @transform_9(%arg0: i32, %arg1: i32) -> (i32, i32, i32) {
    %c0_i32 = arith.constant 0 : i32
    %c0_i32_0 = arith.constant 0 : i32
    %c0_i32_1 = arith.constant 0 : i32
    return %arg1, %c0_i32, %c0_i32_0 : i32, i32, i32
  }
  func.func @transform_10(%arg0: i32, %arg1: i32) -> (i32, i32, i32) {
    %c0_i32 = arith.constant 0 : i32
    %c0_i32_0 = arith.constant 0 : i32
    %c0_i32_1 = arith.constant 0 : i32
    return %arg1, %c0_i32, %c0_i32_0 : i32, i32, i32
  }
  func.func @transform_11(%arg0: i32, %arg1: i32) -> (i32, i32, i32) {
    %c0_i32 = arith.constant 0 : i32
    %c0_i32_0 = arith.constant 0 : i32
    %c0_i32_1 = arith.constant 0 : i32
    return %arg1, %c0_i32, %c0_i32_0 : i32, i32, i32
  }
  func.func @transform_12(%arg0: i32, %arg1: i32) -> (i32, i32, i32) {
    %c0_i32 = arith.constant 0 : i32
    %c0_i32_0 = arith.constant 0 : i32
    %c0_i32_1 = arith.constant 0 : i32
    return %arg1, %c0_i32, %c0_i32_0 : i32, i32, i32
  }
  func.func @transform_13(%arg0: i32, %arg1: i32) -> (i32, i32) {
    %c0_i32 = arith.constant 0 : i32
    %c0_i32_0 = arith.constant 0 : i32
    return %arg0, %c0_i32 : i32, i32
  }
}

</mosaic_0001>

<bundles_post_ra>
// kernel: tpu_custom_call.1
= control target key start
LH: loop header
LB: loop body
LE: loop exit
PB: predicated region body
PF: predicated region fallthrough
CT: control target
= control target key end

     0   :  { %s3114_s0 = inlined_call_operand.vmem [shape: f32[16,32], index: 0, kind: input, shape index: {}]   ;;  %s3115_s1 = inlined_call_operand.vmem [shape: bf16[2,32,96], index: 1, kind: input, shape index: {}]   ;;  %s3116_s2 = inlined_call_operand.vmem [shape: f32[2,3,32], index: 2, kind: input, shape index: {}]   ;;  %s3117_s3 = inlined_call_operand.vmem [shape: bf16[2,32,32], index: 3, kind: input, shape index: {}]   ;;  %s3118_s4 = inlined_call_operand.vmem [shape: f32[2,1,32], index: 4, kind: input, shape index: {}]   ;;  %s3119_s5 = inlined_call_operand.vmem [shape: f32[2,1,32], index: 5, kind: input, shape index: {}]   ;;  %s3120_s6 = inlined_call_operand.vmem [shape: f32[2,1,32], index: 6, kind: input, shape index: {}]   ;;  %s3121_s7 = inlined_call_operand.vmem [shape: bf16[2,32,128], index: 7, kind: input, shape index: {}]   ;;  %s3122_s8 = inlined_call_operand.vmem [shape: f32[2,1,128], index: 8, kind: input, shape index: {}]   ;;  %s3123_s9 = inlined_call_operand.vmem [shape: bf16[2,128,32], index: 9, kind: input, shape index: {}]   ;;  %s3124_s10 = inlined_call_operand.vmem [shape: f32[2,1,32], index: 10, kind: input, shape index: {}]   ;;  %s3125_s11 = inlined_call_operand.vmem [shape: f32[2,1,32], index: 11, kind: input, shape index: {}]   ;;  %s3126_s12 = inlined_call_operand.vmem [shape: f32[2,1,32], index: 12, kind: input, shape index: {}]   ;;  %s3127_s13 = inlined_call_operand.hbm [shape: f32[16,32], index: 13, kind: output, shape index: {}]  }
   0x1   :  { %3131 = sst [smem:[#allocation9_spill]] %s3115_s1 }
   0x2   :  { %3132 = sst [smem:[#allocation10_spill]] %s3116_s2 }
   0x3   :  { %3133 = sst [smem:[#allocation11_spill]] %s3117_s3 }
   0x4   :  { %3134 = sst [smem:[#allocation12_spill]] %s3127_s13 }
   0x5   :  { %18 = vsyncpa [#allocation3], 0  ;;  %s2739_s25 = smov 0   ;;  %s2741_s26 = smov 0  }
   0x6   :  { %s2743_s27 = smov 0  }
   0x7 LB: > { %3135 = sst [smem:[#allocation5_spill]] %s2644_s26  ;;  %s33_s29 = sadd.s32 1, %s2644_s26  ;;  %s2648_s27 = sphi %s2743_s27, %s24_s27   ;;  %s2644_s26 = sphi %s2741_s26, %s3152_s26   ;;  %s2640_s25 = sphi %s2739_s25, %s3151_s25  }
   0x8   : > { %3136 = sst [smem:[#allocation6_spill]] %s2648_s27  ;;  %p34_p0 = scmp.ge.s32.totalorder %s33_s29, 2 }
   0x9   : > { %p2219_p1 = scmp.ge.s32.totalorder %s2648_s27, 1  ;;  %p506_p2 = scmp.lt.s32.totalorder %s2648_s27, 3 }
   0xa   : > { %s3154_s29 = smov (%p34_p0, %s33_s29), 0 }
   0xb   : > { %3137 = sst [smem:[#allocation7_spill]] %s3154_s29  ;;  %p507_p3 = pnand %p2219_p1, %p506_p2 }
   0xd   : > { %510 = sbr.rel (%p507_p3) target bundleno = 4042 (0xfca), region = 72 }
  0x12   : > { %p596_p4 = scmp.lt.s32.totalorder %s2640_s25, 1  ;;  %s3138_s1 = sld [smem:[#allocation9_spill]] }
  0x13   : > { %s3140_s2 = sld [smem:[#allocation10_spill]]  ;;  %p2229_p5 = scmp.ne.s32.totalorder %s2640_s25, 0 }
  0x14   : > { %s2758_s30 = scalar_select %p596_p4, %s2640_s25, 1 }
  0x15   : > { %s3141_s3 = sld [smem:[#allocation11_spill]] }
  0x16   : > { %s2276_s14 = sshll.u32 %s2758_s30, 4  ;;  %s2222_s15 = sshll.u32 %s2758_s30, 2 }
  0x17   : > { %s2792_s20 = scalar_lea.vmem %s3121_s7, %s2276_s14  ;;  %s634_s26 = scalar_lea.vmem %s3124_s10, %s2758_s30 }
  0x18   : > { %s2765_s18 = scalar_lea.vmem %s3138_s1, %s2276_s14  ;;  %s637_s19 = scalar_lea.vmem %s3125_s11, %s2758_s30 }
  0x19   : > { %3139 = sst [smem:[#allocation8_spill]] %s2765_s18  ;;  %s2770_s21 = scalar_lea.vmem %s3140_s2, %s2222_s15 }
  0x1a   : > { %s626_s2 = scalar_lea.vmem %s3122_s8, %s2758_s30  ;;  %s640_s18 = scalar_lea.vmem %s3126_s12, %s2758_s30 }
  0x1b   : > { %s2775_s24 = scalar_lea.vmem %s3141_s3, %s2276_s14  ;;  %s2279_s3 = sshll.u32 %s2758_s30, 6 }
  0x1c   : > { %s2806_s16 = scalar_lea.vmem %s3123_s9, %s2279_s3  ;;  %646 = sbr.rel (%p2229_p5) target bundleno = 35 (0x23), region = 76 }
  0x21   : > { %v647_v0 = vld [vmem:[%s3114_s0] sm:$0xff]  ;;  %vm649_vm0 = vcmask 261120   ;;  %v648_v1 = vld [vmem:[%s3114_s0 + $0x8] sm:$0xff] }
  0x22   : > { %650 = vst.msk [vmem:[#allocation2] sm:$0xff] %vm649_vm0, %v647_v0  ;;  %651 = vst.msk [vmem:[#allocation2 + $0x8] sm:$0xff] %vm649_vm0, %v648_v1 }
  0x23 PF: > { %vm656_vm1 = vcmask 261120   ;;  %s3142_s3 = sld [smem:[#allocation8_spill]]  ;;  %v2650_v17 = vmov 0.0   ;;  %vm2651_vm2 = vmmov 0   ;;  %v762_v19 = vlaneseq  ;;  %v2847_v21 = vld [vmem:[%s2770_s21] sm:$0x7]  ;;  %s3143_s27 = scalar_lea.vmem %s3119_s5, %s2758_s30 }
  0x24   : > { %2330 = vmatprep.subr.bf16.mxu0 %v2650_v17  ;;  %2334 = vmatprep.mubr.msk.bf16.mxu0 %vm2651_vm2, %v2650_v17  ;;  %s2652_s25 = smov 32   ;;  %v2230_v32 = vld [vmem:[%s3143_s27] ss:$0 sm:$0xff]  ;;  %s3144_s14 = scalar_lea.vmem %s3120_s6, %s2758_s30  ;;  %vm797_vm3 = vcmask 64512   ;;  %vm923_vm4 = vcmask 1043456   ;;  %vm1704_vm5 = vcmask 130048  }
  0x25   : > { %2350 = vmatprep.subr.bf16.mxu1 %v2650_v17  ;;  %2352 = vmatprep.mubr.msk.bf16.mxu1 %vm2651_vm2, %v2650_v17  ;;  %v2844_v20 = vshrl.u32 %v762_v19, 7  ;;  %v2231_v36 = vld [vmem:[%s3144_s14] ss:$0 sm:$0xff]  ;;  %s2653_s15 = smov 96   ;;  %s2654_s22 = smov 64   ;;  %vm1707_vm6 = vcmask 195584  }
  0x26   : > { %s2655_s23 = smov 88   ;;  %s2656_s28 = smov 120  }
  0x27   : > { %v770_v22 = vsub.s32 1, %v2844_v20  ;;  %v764_v50 = vsub.s32 0, %v2844_v20  ;;  %s2657_s29 = smov 56   ;;  %s2660_s13 = smov 48  }
  0x28   : > { %s2661_s21 = smov 72   ;;  %s2662_s27 = smov 104  }
  0x29   : > { %v2822_v2 = vld [vmem:[#allocation2] sm:$0xff]  ;;  %v2824_v3 = vld [vmem:[#allocation2 + $0x8] sm:$0xff]  ;;  %v771_v23 = vrot.slane %v2847_v21, %v770_v22  ;;  %v765_v51 = vrot.slane %v2847_v21, %v764_v50  ;;  %s2663_s1 = smov 40   ;;  %s2664_s17 = smov 8  }
  0x2a   : > { %v657_v4 = vsel %vm656_vm1, %v2822_v2, 0.0  ;;  %v660_v5 = vsel %vm656_vm1, %v2824_v3, 0.0  ;;  %v2534_v16 = vld [vmem:[%s3142_s3 + $0x8] sm:$0xff]   ;;  %v2535_v18 = vld [vmem:[%s3142_s3] sm:$0xff]   ;;  %s2658_s3 = smov 80   ;;  %s2665_s14 = smov 16  }
  0x2b   : > { %658 = vadd.xlane.f32.xlu0 %v657_v4  ;;  %2331 = vmatpush3.bf16.msra.mxu0 %v2534_v16 }
  0x2c   : > { %2332 = vmatprep.subr.bf16.mxu0 %v2650_v17 }
  0x2f   : > { %661 = vadd.xlane.f32.xlu0 %v660_v5  ;;  %2333 = vmatpush3.bf16.msra.mxu0 %v2535_v18 }
  0x30   : > { %2338 = vmatprep.subr.bf16.mxu0 %v2650_v17 }
  0x45   : > { %773 = vrot.lane.b32.xlu0 %v771_v23, %s2652_s25  ;;  %s2659_s25 = smov 112  }
  0xb4   : > { %v659_v6 = vpop.xlane.xlu0 %658 }
  0xb5   : > { %v664_v7 = vmul.f32 0.03125, %v659_v6 }
  0xb7   : > { %v666_v8 = vsub.f32 %v2822_v2, %v664_v7 }
  0xb8   : > { %v662_v9 = vpop.xlane.xlu0 %661 }
  0xb9   : > { %v665_v10 = vmul.f32 0.03125, %v662_v9  ;;  %v668_v11 = vmul.f32 %v666_v8, %v666_v8 }
  0xbb   : > { %v667_v12 = vsub.f32 %v2824_v3, %v665_v10  ;;  %v670_v13 = vsel %vm656_vm1, %v668_v11, 0.0 }
  0xbc   : > { %671 = vadd.xlane.f32.xlu1 %v670_v13  ;;  %v774_v41 = vpop.permute.xlu0 %773 }
  0xbd   : > { %v669_v14 = vmul.f32 %v667_v12, %v667_v12 }
  0xbf   : > { %v673_v15 = vsel %vm656_vm1, %v669_v14, 0.0 }
  0xc0   : > { %674 = vadd.xlane.f32.xlu1 %v673_v15 }
 0x145   : > { %v672_v24 = vpop.xlane.xlu1 %671 }
 0x146   : > { %v676_v25 = vmul.f32 0.03125, %v672_v24 }
 0x148   : > { %v678_v26 = vadd.f32 1e-05, %v676_v25 }
 0x149   : > { %v675_v27 = vpop.xlane.xlu1 %674 }
 0x14a   : > { %2548 = vrsqrt.f32 %v678_v26  ;;  %v677_v28 = vmul.f32 0.03125, %v675_v27 }
 0x14c   : > { %v679_v29 = vadd.f32 1e-05, %v677_v28 }
 0x14e   : > { %2550 = vrsqrt.f32 %v679_v29 }
 0x157   : > { %v2549_v30 = vpop.eup %2548 }
 0x158   : > { %v682_v31 = vmul.f32 %v2549_v30, %v666_v8  ;;  %v780_v8 = vsub.s32 2, %v2844_v20 }
 0x15a   : > { %v690_v35 = vmul.f32 %v2230_v32, %v682_v31  ;;  %v781_v9 = vrot.slane %v2847_v21, %v780_v8 }
 0x15b   : > { %v2551_v33 = vpop.eup %2550 }
 0x15c   : > { %v683_v34 = vmul.f32 %v2551_v33, %v667_v12  ;;  %v698_v38 = vadd.f32 %v2231_v36, %v690_v35 }
 0x15e   : > { %v691_v37 = vmul.f32 %v2230_v32, %v683_v34 }
 0x160   : > { %v699_v39 = vadd.f32 %v2231_v36, %v691_v37 }
 0x162   : > { %v700_v40 = vpack.c.bf16 %v699_v39, %v698_v38 }
 0x164   : > { %2335 = vmatmul.mubr.msk.bf16.vlgmr.msra.gmra.mxu0 %vm656_vm1, %v700_v40 }
 0x165   : > { %2340 = vmatprep.mubr.msk.bf16.mxu0 %vm2651_vm2, %v2650_v17 }
 0x224   : > { %v754_v42 = vpop.f32.mrf.mxu0 }
 0x225   : > { %v776_v43 = vadd.f32 %v774_v41, %v754_v42  ;;  %v766_v54 = vadd.f32 %v765_v51, %v754_v42 }
 0x226   : > { %v2336_v44 = vpop.f32.mrf.mxu0 }
 0x227   : > { %v2864_v45 = vpack.c.bf16 %v776_v43, %v776_v43  ;;  %v2874_v56 = vpack.c.bf16 %v766_v54, %v766_v54 }
 0x228   : > { %v757_v46 = vpop.f32.mrf.mxu0 }
 0x229   : > { %v777_v47 = vadd.f32 %v774_v41, %v757_v46  ;;  %795 = vrot.lane.b32.xlu1 %v2864_v45, %s2653_s15  ;;  %v767_v58 = vadd.f32 %v765_v51, %v757_v46 }
 0x22a   : > { %v2337_v48 = vpop.f32.mrf.mxu0 }
 0x22b   : > { %v2867_v49 = vpack.c.bf16 %v777_v47, %v777_v47  ;;  %v2882_v59 = vpack.c.bf16 %v767_v58, %v767_v58 }
 0x22d   : > { %845 = vrot.lane.b32.xlu1 %v2867_v49, %s2653_s15  ;;  %s2666_s15 = smov 24  }
 0x29b   : > { %v796_v52 = vpop.permute.xlu1 %795 }
 0x29c   : > { %v802_v53 = vsel %vm797_vm3, %v796_v52, 0 }
 0x29d   : > { %2339 = vmatpush3.bf16.xpose.msra.mxu0 %v802_v53 }
 0x29e   : > { %2344 = vmatprep.subr.bf16.mxu0 %v2650_v17 }
 0x29f   : > { %v846_v55 = vpop.permute.xlu1 %845 }
 0x2a0   : > { %v851_v57 = vsel %vm797_vm3, %v846_v55, 0 }
 0x2a4   : > { %2341 = vmatmul.mubr.msk.bf16.vlgmr.msra.gmra.mxu0 %vm797_vm3, %v2874_v56 }
 0x2a5   : > { %2345 = vmatpush3.bf16.xpose.msra.mxu0 %v851_v57  ;;  %2346 = vmatprep.mubr.msk.bf16.mxu0 %vm2651_vm2, %v2650_v17 }
 0x2a6   : > { %2356 = vmatprep.subr.bf16.mxu0 %v2650_v17 }
 0x2ac   : > { %2347 = vmatmul.mubr.msk.bf16.vlgmr.msra.gmra.mxu0 %vm797_vm3, %v2882_v59 }
 0x2ad   : > { %2358 = vmatprep.mubr.msk.bf16.mxu0 %vm2651_vm2, %v2650_v17 }
 0x364   : > { %v838_v60 = vpop.f32.mrf.mxu0 }
 0x365   : > { %v893_v61 = vsel %vm797_vm3, %v838_v60, -inf }
 0x366   : > { %894 = vmax.xlane.f32.xlu1 %v893_v61  ;;  %v2342_v62 = vpop.f32.mrf.mxu0 }
 0x368   : > { %v841_v63 = vpop.f32.mrf.mxu0 }
 0x36a   : > { %v2343_v0 = vpop.f32.mrf.mxu0 }
 0x36c   : > { %v887_v1 = vpop.f32.mrf.mxu0 }
 0x36d   : > { %v896_v4 = vsel %vm797_vm3, %v887_v1, -inf }
 0x36e   : > { %897 = vmax.xlane.f32.xlu0 %v896_v4  ;;  %v2348_v5 = vpop.f32.mrf.mxu0 }
 0x370   : > { %v890_v6 = vpop.f32.mrf.mxu0 }
 0x372   : > { %v2349_v7 = vpop.f32.mrf.mxu0 }
 0x384   : > { %783 = vrot.lane.b32.xlu0 %v781_v9, %s2654_s22 }
 0x3ef   : > { %v895_v16 = vpop.xlane.xlu1 %894 }
 0x3f0   : > { %v899_v18 = vsub.f32 %v838_v60, %v895_v16 }
 0x3f2   : > { %v901_v19 = vmul.f32 1.442695, %v899_v18 }
 0x3f4   : > { %2552 = vpow2.f32 %v901_v19 }
 0x3f7   : > { %v898_v10 = vpop.xlane.xlu0 %897 }
 0x3f8   : > { %v900_v20 = vsub.f32 %v887_v1, %v898_v10 }
 0x3fa   : > { %v903_v21 = vmul.f32 1.442695, %v900_v20 }
 0x3fb   : > { %v784_v11 = vpop.permute.xlu0 %783 }
 0x3fc   : > { %v786_v12 = vadd.f32 %v784_v11, %v754_v42  ;;  %v787_v13 = vadd.f32 %v784_v11, %v757_v46  ;;  %2554 = vpow2.f32 %v903_v21 }
 0x3fe   : > { %v2892_v14 = vpack.c.bf16 %v786_v12, %v786_v12  ;;  %v2894_v15 = vpack.c.bf16 %v787_v13, %v787_v13 }
 0x400   : > { %968 = vrot.lane.b32.xlu0 %v2894_v15, %s2654_s22  ;;  %918 = vrot.lane.b32.xlu1 %v2892_v14, %s2654_s22 }
 0x401   : > { %v2553_v22 = vpop.eup %2552 }
 0x402   : > { %v905_v23 = vsel %vm797_vm3, %v2553_v22, 0.0 }
 0x404   : > { %1019 = vrot.lane.b32.xlu0 %v2864_v45, %s2655_s23 }
 0x408   : > { %1017 = vrot.lane.b32.xlu0 %v2874_v56, %s2656_s28 }
 0x409   : > { %v2555_v24 = vpop.eup %2554 }
 0x40a   : > { %v908_v25 = vsel %vm797_vm3, %v2555_v24, 0.0 }
 0x424   : > { %906 = vadd.xlane.f32.xlu1 %v905_v23 }
 0x428   : > { %909 = vadd.xlane.f32.xlu1 %v908_v25 }
 0x439   : > { %1070 = vrot.lane.b32.xlu1 %v2867_v49, %s2655_s23  ;;  %s3145_s23 = scalar_lea.vmem %s3118_s4, %s2758_s30 }
 0x43d   : > { %1068 = vrot.lane.b32.xlu1 %v2882_v59, %s2656_s28 }
 0x472   : > { %v969_v26 = vpop.permute.xlu0 %968  ;;  %v919_v27 = vpop.permute.xlu1 %918 }
 0x473   : > { %v974_v28 = vsel %vm923_vm4, %v969_v26, 0  ;;  %v925_v29 = vsel %vm923_vm4, %v919_v27, 0 }
 0x474   : > { %2351 = vmatpush3.bf16.msra.mxu1 %v925_v29  ;;  %2357 = vmatpush3.bf16.msra.mxu0 %v974_v28 }
 0x475   : > { %2362 = vmatprep.subr.bf16.mxu1 %v2650_v17  ;;  %2368 = vmatprep.subr.bf16.mxu0 %v2650_v17 }
 0x476   : > { %v1020_v34 = vpop.permute.xlu0 %1019 }
 0x477   : > { %v1025_v37 = vsel %vm797_vm3, %v1020_v34, 0 }
 0x47a   : > { %v1018_v42 = vpop.permute.xlu0 %1017 }
 0x4ad   : > { %v907_v30 = vpop.xlane.xlu1 %906 }
 0x4ae   : > { %2556 = vrcp.f32 %v907_v30 }
 0x4b1   : > { %v910_v31 = vpop.xlane.xlu1 %909 }
 0x4b2   : > { %2558 = vrcp.f32 %v910_v31 }
 0x4b5   : > { %v1071_v39 = vpop.permute.xlu1 %1070 }
 0x4b6   : > { %v1076_v41 = vsel %vm797_vm3, %v1071_v39, 0 }
 0x4b9   : > { %v1069_v43 = vpop.permute.xlu1 %1068 }
 0x4bb   : > { %v2557_v32 = vpop.eup %2556 }
 0x4bc   : > { %v913_v33 = vmul.f32 %v2557_v32, %v2553_v22 }
 0x4be   : > { %v915_v35 = vpack.c.bf16 %v913_v33, %v913_v33 }
 0x4bf   : > { %v2559_v36 = vpop.eup %2558 }
 0x4c0   : > { %2353 = vmatmul.mubr.msk.bf16.vlgmr.msra.gmra.mxu1 %vm797_vm3, %v915_v35  ;;  %v914_v38 = vmul.f32 %v2559_v36, %v2555_v24 }
 0x4c1   : > { %2363 = vmatpush3.bf16.xpose.msra.mxu1 %v1025_v37  ;;  %2364 = vmatprep.mubr.msk.bf16.mxu1 %vm2651_vm2, %v2650_v17 }
 0x4c2   : > { %v916_v40 = vpack.c.bf16 %v914_v38, %v914_v38  ;;  %2374 = vmatprep.subr.bf16.mxu1 %v2650_v17 }
 0x4c4   : > { %2359 = vmatmul.mubr.msk.bf16.vlgmr.msra.gmra.mxu0 %vm797_vm3, %v916_v40 }
 0x4c5   : > { %2369 = vmatpush3.bf16.xpose.msra.mxu0 %v1076_v41  ;;  %2370 = vmatprep.mubr.msk.bf16.mxu0 %vm2651_vm2, %v2650_v17 }
 0x4c6   : > { %2380 = vmatprep.subr.bf16.mxu0 %v2650_v17 }
 0x4c8   : > { %2365 = vmatmul.mubr.msk.bf16.vlgmr.msra.gmra.mxu1 %vm797_vm3, %v1018_v42 }
 0x4c9   : > { %2376 = vmatprep.mubr.msk.bf16.mxu1 %vm2651_vm2, %v2650_v17 }
 0x4cc   : > { %2371 = vmatmul.mubr.msk.bf16.vlgmr.msra.gmra.mxu0 %vm797_vm3, %v1069_v43 }
 0x4cd   : > { %2382 = vmatprep.mubr.msk.bf16.mxu0 %vm2651_vm2, %v2650_v17 }
 0x580   : > { %v2924_v44 = vpop.f32.mrf.mxu1 }
 0x582   : > { %v2354_v46 = vpop.f32.mrf.mxu1 }
 0x584   : > { %v964_v47 = vpop.f32.mrf.mxu1  ;;  %v2926_v48 = vpop.f32.mrf.mxu0 }
 0x586   : > { %v2355_v50 = vpop.f32.mrf.mxu1  ;;  %v2360_v51 = vpop.f32.mrf.mxu0 }
 0x588   : > { %v1013_v52 = vpop.f32.mrf.mxu0  ;;  %v1061_v53 = vpop.f32.mrf.mxu1 }
 0x589   : > { %v1118_v54 = vsel %vm797_vm3, %v1061_v53, -inf }
 0x58a   : > { %1119 = vmax.xlane.f32.xlu0 %v1118_v54  ;;  %v2361_v55 = vpop.f32.mrf.mxu0  ;;  %v2366_v57 = vpop.f32.mrf.mxu1 }
 0x58c   : > { %v1064_v58 = vpop.f32.mrf.mxu1  ;;  %v1112_v60 = vpop.f32.mrf.mxu0 }
 0x58d   : > { %v1121_v61 = vsel %vm797_vm3, %v1112_v60, -inf }
 0x58e   : > { %v2367_v62 = vpop.f32.mrf.mxu1  ;;  %1122 = vmax.xlane.f32.xlu1 %v1121_v61  ;;  %v2372_v63 = vpop.f32.mrf.mxu0 }
 0x590   : > { %v1115_v0 = vpop.f32.mrf.mxu0 }
 0x592   : > { %v2373_v1 = vpop.f32.mrf.mxu0 }
 0x59f   : > { %1190 = vrot.lane.b32.xlu1 %v2894_v15, %s2657_s29 }
 0x5a3   : > { %1240 = vrot.lane.b32.xlu1 %v2864_v45, %s2658_s3 }
 0x5a7   : > { %1290 = vrot.lane.b32.xlu1 %v2867_v49, %s2658_s3 }
 0x5ab   : > { %1288 = vrot.lane.b32.xlu1 %v2882_v59, %s2659_s25 }
 0x613   : > { %v1120_v4 = vpop.xlane.xlu0 %1119 }
 0x614   : > { %v1124_v5 = vsub.f32 %v1061_v53, %v1120_v4 }
 0x616   : > { %v1126_v6 = vmul.f32 1.442695, %v1124_v5 }
 0x617   : > { %v1123_v7 = vpop.xlane.xlu1 %1122 }
 0x618   : > { %2560 = vpow2.f32 %v1126_v6  ;;  %v1125_v8 = vsub.f32 %v1112_v60, %v1123_v7 }
 0x61a   : > { %v1128_v9 = vmul.f32 1.442695, %v1125_v8 }
 0x61b   : > { %v1191_v10 = vpop.permute.xlu1 %1190 }
 0x61c   : > { %2562 = vpow2.f32 %v1128_v9  ;;  %v1196_v11 = vsel %vm923_vm4, %v1191_v10, 0 }
 0x61d   : > { %2381 = vmatpush3.bf16.msra.mxu0 %v1196_v11 }
 0x61e   : > { %2392 = vmatprep.subr.bf16.mxu0 %v2650_v17 }
 0x61f   : > { %v1241_v24 = vpop.permute.xlu1 %1240 }
 0x620   : > { %v1246_v28 = vsel %vm797_vm3, %v1241_v24, 0 }
 0x623   : > { %v1291_v30 = vpop.permute.xlu1 %1290 }
 0x624   : > { %v1296_v32 = vsel %vm797_vm3, %v1291_v30, 0 }
 0x625   : > { %v2561_v12 = vpop.eup %2560 }
 0x626   : > { %v1130_v13 = vsel %vm797_vm3, %v2561_v12, 0.0 }
 0x627   : > { %1131 = vadd.xlane.f32.xlu0 %v1130_v13  ;;  %v1289_v34 = vpop.permute.xlu1 %1288 }
 0x629   : > { %v2563_v16 = vpop.eup %2562 }
 0x62a   : > { %v1133_v18 = vsel %vm797_vm3, %v2563_v16, 0.0 }
 0x62b   : > { %1134 = vadd.xlane.f32.xlu0 %v1133_v18 }
 0x641   : > { %1142 = vrot.lane.b32.xlu0 %v2892_v14, %s2657_s29 }
 0x645   : > { %1238 = vrot.lane.b32.xlu0 %v2874_v56, %s2659_s25 }
 0x6b0   : > { %v1132_v19 = vpop.xlane.xlu0 %1131 }
 0x6b1   : > { %2564 = vrcp.f32 %v1132_v19 }
 0x6b4   : > { %v1135_v20 = vpop.xlane.xlu0 %1134 }
 0x6b5   : > { %2566 = vrcp.f32 %v1135_v20 }
 0x6b8   : > { %v1143_v21 = vpop.permute.xlu0 %1142 }
 0x6b9   : > { %v1148_v22 = vsel %vm923_vm4, %v1143_v21, 0 }
 0x6ba   : > { %2375 = vmatpush3.bf16.msra.mxu1 %v1148_v22 }
 0x6bb   : > { %2386 = vmatprep.subr.bf16.mxu1 %v2650_v17 }
 0x6bc   : > { %v1239_v33 = vpop.permute.xlu0 %1238 }
 0x6be   : > { %v2565_v23 = vpop.eup %2564 }
 0x6bf   : > { %v1138_v25 = vmul.f32 %v2565_v23, %v2561_v12 }
 0x6c1   : > { %v1140_v26 = vpack.c.bf16 %v1138_v25, %v1138_v25 }
 0x6c2   : > { %v2567_v27 = vpop.eup %2566 }
 0x6c3   : > { %2377 = vmatmul.mubr.msk.bf16.vlgmr.msra.gmra.mxu1 %vm797_vm3, %v1140_v26  ;;  %v1139_v29 = vmul.f32 %v2567_v27, %v2563_v16 }
 0x6c4   : > { %2387 = vmatpush3.bf16.xpose.msra.mxu1 %v1246_v28  ;;  %2388 = vmatprep.mubr.msk.bf16.mxu1 %vm2651_vm2, %v2650_v17 }
 0x6c5   : > { %v1141_v31 = vpack.c.bf16 %v1139_v29, %v1139_v29  ;;  %2398 = vmatprep.subr.bf16.mxu1 %v2650_v17 }
 0x6c7   : > { %2383 = vmatmul.mubr.msk.bf16.vlgmr.msra.gmra.mxu0 %vm797_vm3, %v1141_v31 }
 0x6c8   : > { %2393 = vmatpush3.bf16.xpose.msra.mxu0 %v1296_v32  ;;  %2394 = vmatprep.mubr.msk.bf16.mxu0 %vm2651_vm2, %v2650_v17 }
 0x6c9   : > { %2404 = vmatprep.subr.bf16.mxu0 %v2650_v17 }
 0x6cb   : > { %2389 = vmatmul.mubr.msk.bf16.vlgmr.msra.gmra.mxu1 %vm797_vm3, %v1239_v33 }
 0x6cc   : > { %2400 = vmatprep.mubr.msk.bf16.mxu1 %vm2651_vm2, %v2650_v17 }
 0x6cf   : > { %2395 = vmatmul.mubr.msk.bf16.vlgmr.msra.gmra.mxu0 %vm797_vm3, %v1289_v34 }
 0x6d0   : > { %2406 = vmatprep.mubr.msk.bf16.mxu0 %vm2651_vm2, %v2650_v17 }
 0x783   : > { %v2958_v35 = vpop.f32.mrf.mxu1 }
 0x785   : > { %v2378_v36 = vpop.f32.mrf.mxu1 }
 0x787   : > { %v1187_v37 = vpop.f32.mrf.mxu1  ;;  %v2960_v38 = vpop.f32.mrf.mxu0 }
 0x788   : > { %v2519_v39 = vpack.i.bf16 %v2960_v38, %v2958_v35 }
 0x789   : > { %v2379_v40 = vpop.f32.mrf.mxu1  ;;  %v2384_v41 = vpop.f32.mrf.mxu0 }
 0x78b   : > { %v1235_v42 = vpop.f32.mrf.mxu0  ;;  %v1282_v43 = vpop.f32.mrf.mxu1 }
 0x78c   : > { %v1338_v46 = vsel %vm797_vm3, %v1282_v43, -inf }
 0x78d   : > { %1339 = vmax.xlane.f32.xlu0 %v1338_v46  ;;  %v2385_v47 = vpop.f32.mrf.mxu0  ;;  %v2390_v50 = vpop.f32.mrf.mxu1 }
 0x78f   : > { %v1285_v51 = vpop.f32.mrf.mxu1  ;;  %v1332_v52 = vpop.f32.mrf.mxu0 }
 0x790   : > { %v1341_v53 = vsel %vm797_vm3, %v1332_v52, -inf }
 0x791   : > { %v2391_v54 = vpop.f32.mrf.mxu1  ;;  %1342 = vmax.xlane.f32.xlu1 %v1341_v53  ;;  %v2396_v55 = vpop.f32.mrf.mxu0 }
 0x793   : > { %v1335_v57 = vpop.f32.mrf.mxu0 }
 0x795   : > { %v2397_v58 = vpop.f32.mrf.mxu0 }
 0x7a2   : > { %1410 = vrot.lane.b32.xlu1 %v2894_v15, %s2660_s13 }
 0x7a6   : > { %1460 = vrot.lane.b32.xlu1 %v2864_v45, %s2661_s21 }
 0x7aa   : > { %1510 = vrot.lane.b32.xlu1 %v2867_v49, %s2661_s21 }
 0x7ae   : > { %1508 = vrot.lane.b32.xlu1 %v2882_v59, %s2662_s27 }
 0x816   : > { %v1340_v60 = vpop.xlane.xlu0 %1339 }
 0x817   : > { %v1344_v61 = vsub.f32 %v1282_v43, %v1340_v60 }
 0x819   : > { %v1346_v62 = vmul.f32 1.442695, %v1344_v61 }
 0x81a   : > { %v1343_v63 = vpop.xlane.xlu1 %1342 }
 0x81b   : > { %2568 = vpow2.f32 %v1346_v62  ;;  %v1345_v0 = vsub.f32 %v1332_v52, %v1343_v63 }
 0x81d   : > { %v1348_v1 = vmul.f32 1.442695, %v1345_v0 }
 0x81e   : > { %v1411_v4 = vpop.permute.xlu1 %1410 }
 0x81f   : > { %2570 = vpow2.f32 %v1348_v1  ;;  %v1416_v5 = vsel %vm923_vm4, %v1411_v4, 0 }
 0x820   : > { %2405 = vmatpush3.bf16.msra.mxu0 %v1416_v5 }
 0x821   : > { %2416 = vmatprep.subr.bf16.mxu0 %v2650_v17 }
 0x822   : > { %v1461_v12 = vpop.permute.xlu1 %1460 }
 0x823   : > { %v1466_v19 = vsel %vm797_vm3, %v1461_v12, 0 }
 0x826   : > { %v1511_v20 = vpop.permute.xlu1 %1510 }
 0x827   : > { %v1516_v22 = vsel %vm797_vm3, %v1511_v20, 0 }
 0x828   : > { %v2569_v45 = vpop.eup %2568 }
 0x829   : > { %v1350_v49 = vsel %vm797_vm3, %v2569_v45, 0.0 }
 0x82a   : > { %1351 = vadd.xlane.f32.xlu0 %v1350_v49  ;;  %v1509_v24 = vpop.permute.xlu1 %1508 }
 0x82c   : > { %v2571_v6 = vpop.eup %2570 }
 0x82d   : > { %v1353_v59 = vsel %vm797_vm3, %v2571_v6, 0.0 }
 0x82e   : > { %1354 = vadd.xlane.f32.xlu0 %v1353_v59  ;;  %v2537_v59 = vld [vmem:[%s2775_s24] sm:$0xff]  }
 0x844   : > { %1362 = vrot.lane.b32.xlu0 %v2892_v14, %s2660_s13  ;;  %s2667_s13 = smov [#allocation2]  }
 0x845   : > { %s2036_s21 = sshll.u32 %s2667_s13, 4  ;;  %s2037_s21 = int_to_ptr.vmem [resolvable:$true] %s2036_s21 }
 0x846   : > { %p2605_p10 = scmp.lt.s32.totalorder %s2037_s21, %s2037_s21 }
 0x848   : > { %1458 = vrot.lane.b32.xlu0 %v2874_v56, %s2662_s27 }
 0x8b3   : > { %v1352_v7 = vpop.xlane.xlu0 %1351 }
 0x8b4   : > { %2572 = vrcp.f32 %v1352_v7 }
 0x8b7   : > { %v1355_v8 = vpop.xlane.xlu0 %1354 }
 0x8b8   : > { %2574 = vrcp.f32 %v1355_v8 }
 0x8bb   : > { %v1363_v9 = vpop.permute.xlu0 %1362 }
 0x8bc   : > { %v1368_v10 = vsel %vm923_vm4, %v1363_v9, 0 }
 0x8bd   : > { %2399 = vmatpush3.bf16.msra.mxu1 %v1368_v10 }
 0x8be   : > { %2410 = vmatprep.subr.bf16.mxu1 %v2650_v17 }
 0x8bf   : > { %v1459_v23 = vpop.permute.xlu0 %1458 }
 0x8c1   : > { %v2573_v11 = vpop.eup %2572 }
 0x8c2   : > { %v1358_v13 = vmul.f32 %v2573_v11, %v2569_v45 }
 0x8c4   : > { %v1360_v16 = vpack.c.bf16 %v1358_v13, %v1358_v13 }
 0x8c5   : > { %v2575_v18 = vpop.eup %2574 }
 0x8c6   : > { %2401 = vmatmul.mubr.msk.bf16.vlgmr.msra.gmra.mxu1 %vm797_vm3, %v1360_v16  ;;  %v1359_v56 = vmul.f32 %v2575_v18, %v2571_v6  ;;  %v2536_v6 = vld [vmem:[%s2775_s24 + $0x8] sm:$0xff]  }
 0x8c7   : > { %2411 = vmatpush3.bf16.xpose.msra.mxu1 %v1466_v19  ;;  %2412 = vmatprep.mubr.msk.bf16.mxu1 %vm2651_vm2, %v2650_v17 }
 0x8c8   : > { %v1361_v21 = vpack.c.bf16 %v1359_v56, %v1359_v56  ;;  %2422 = vmatprep.subr.bf16.mxu1 %v2650_v17 }
 0x8ca   : > { %2407 = vmatmul.mubr.msk.bf16.vlgmr.msra.gmra.mxu0 %vm797_vm3, %v1361_v21 }
 0x8cb   : > { %2417 = vmatpush3.bf16.xpose.msra.mxu0 %v1516_v22  ;;  %2418 = vmatprep.mubr.msk.bf16.mxu0 %vm2651_vm2, %v2650_v17 }
 0x8cc   : > { %2428 = vmatprep.subr.bf16.mxu0 %v2650_v17 }
 0x8ce   : > { %2413 = vmatmul.mubr.msk.bf16.vlgmr.msra.gmra.mxu1 %vm797_vm3, %v1459_v23 }
 0x8cf   : > { %2424 = vmatprep.mubr.msk.bf16.mxu1 %vm2651_vm2, %v2650_v17 }
 0x8d2   : > { %2419 = vmatmul.mubr.msk.bf16.vlgmr.msra.gmra.mxu0 %vm797_vm3, %v1509_v24 }
 0x8d3   : > { %2430 = vmatprep.mubr.msk.bf16.mxu0 %vm2651_vm2, %v2650_v17 }
 0x986   : > { %v1404_v25 = vpop.f32.mrf.mxu1 }
 0x988   : > { %v2402_v26 = vpop.f32.mrf.mxu1 }
 0x98a   : > { %v1407_v27 = vpop.f32.mrf.mxu1  ;;  %v1452_v28 = vpop.f32.mrf.mxu0 }
 0x98b   : > { %v2524_v50 = vpack.i.bf16 %v1452_v28, %v1404_v25 }
 0x98c   : > { %v2403_v29 = vpop.f32.mrf.mxu1  ;;  %v2408_v30 = vpop.f32.mrf.mxu0 }
 0x98e   : > { %v1455_v31 = vpop.f32.mrf.mxu0  ;;  %v1502_v32 = vpop.f32.mrf.mxu1 }
 0x98f   : > { %v1558_v33 = vsel %vm797_vm3, %v1502_v32, -inf }
 0x990   : > { %1559 = vmax.xlane.f32.xlu0 %v1558_v33  ;;  %v2409_v34 = vpop.f32.mrf.mxu0  ;;  %v2414_v36 = vpop.f32.mrf.mxu1 }
 0x992   : > { %v1505_v37 = vpop.f32.mrf.mxu1  ;;  %v1552_v40 = vpop.f32.mrf.mxu0 }
 0x993   : > { %v1561_v41 = vsel %vm797_vm3, %v1552_v40, -inf }
 0x994   : > { %v2415_v42 = vpop.f32.mrf.mxu1  ;;  %1562 = vmax.xlane.f32.xlu1 %v1561_v41  ;;  %v2420_v43 = vpop.f32.mrf.mxu0 }
 0x996   : > { %v1555_v46 = vpop.f32.mrf.mxu0 }
 0x998   : > { %v2421_v47 = vpop.f32.mrf.mxu0 }
 0x9a5   : > { %1630 = vrot.lane.b32.xlu1 %v2894_v15, %s2663_s1 }
 0x9a9   : > { %2520 = vrot.lane.b32.xlu1 %v2519_v39, %s2664_s17 }
 0x9ad   : > { %2525 = vrot.lane.b32.xlu1 %v2524_v50, %s2665_s14 }
 0xa19   : > { %v1560_v51 = vpop.xlane.xlu0 %1559 }
 0xa1a   : > { %v1564_v52 = vsub.f32 %v1502_v32, %v1560_v51 }
 0xa1c   : > { %v1566_v53 = vmul.f32 1.442695, %v1564_v52 }
 0xa1d   : > { %v1563_v54 = vpop.xlane.xlu1 %1562 }
 0xa1e   : > { %2576 = vpow2.f32 %v1566_v53  ;;  %v1565_v55 = vsub.f32 %v1552_v40, %v1563_v54 }
 0xa20   : > { %v1568_v57 = vmul.f32 1.442695, %v1565_v55 }
 0xa21   : > { %v1631_v58 = vpop.permute.xlu1 %1630 }
 0xa22   : > { %2578 = vpow2.f32 %v1568_v57  ;;  %v1636_v15 = vsel %vm923_vm4, %v1631_v58, 0 }
 0xa23   : > { %2429 = vmatpush3.bf16.msra.mxu0 %v1636_v15  ;;  %v2538_v15 = vld [vmem:[%s2792_s20 + $0x8] sm:$0xff]  }
 0xa24   : > { %2442 = vmatprep.subr.bf16.mxu0 %v2650_v17 }
 0xa25   : > { %v2521_v19 = vpop.permute.xlu1 %2520 }
 0xa26   : > { %v2523_v20 = vunpack.i.h.bf16 %v2521_v19  ;;  %v2522_v21 = vunpack.i.l.bf16 %v2521_v19  ;;  %v2547_v19 = vld [vmem:[%s2806_s16] sm:$0xff]  }
 0xa28   : > { %v1703_v25 = vsel %vm797_vm3, %v2926_v48, %v2523_v20  ;;  %v1702_v26 = vsel %vm797_vm3, %v2924_v44, %v2522_v21  ;;  %v2251_v48 = vld [vmem:[%s3145_s23] ss:$0 sm:$0xff] }
 0xa29   : > { %v2526_v56 = vpop.permute.xlu1 %2525 }
 0xa2a   : > { %v2528_v22 = vunpack.i.h.bf16 %v2526_v56  ;;  %v2527_v23 = vunpack.i.l.bf16 %v2526_v56  ;;  %v2257_v56 = vld [vmem:[%s626_s2] ss:$0 sm:$0xff]  ;;  %s3146_s2 = sld [smem:[#allocation6_spill]] }
 0xa2b   : > { %v2577_v60 = vpop.eup %2576 }
 0xa2c   : > { %v1570_v35 = vsel %vm797_vm3, %v2577_v60, 0.0  ;;  %v1705_v29 = vsel %vm1704_vm5, %v1702_v26, %v2527_v23  ;;  %v1706_v30 = vsel %vm1704_vm5, %v1703_v25, %v2528_v22 }
 0xa2d   : > { %1571 = vadd.xlane.f32.xlu0 %v1570_v35 }
 0xa2f   : > { %v2579_v38 = vpop.eup %2578 }
 0xa30   : > { %v1573_v39 = vsel %vm797_vm3, %v2579_v38, 0.0  ;;  %s3147_s27 = sadd.s32 4294967295, %s3146_s2  }
 0xa31   : > { %1574 = vadd.xlane.f32.xlu0 %v1573_v39  ;;  %p3088_p6 = scmp.eq.s32.totalorder %s3147_s27, 1 }
 0xa47   : > { %1582 = vrot.lane.b32.xlu0 %v2892_v14, %s2663_s1 }
 0xab6   : > { %v1572_v61 = vpop.xlane.xlu0 %1571 }
 0xab7   : > { %2580 = vrcp.f32 %v1572_v61 }
 0xaba   : > { %v1575_v62 = vpop.xlane.xlu0 %1574 }
 0xabb   : > { %2582 = vrcp.f32 %v1575_v62 }
 0xabe   : > { %v1583_v63 = vpop.permute.xlu0 %1582 }
 0xabf   : > { %v1588_v0 = vsel %vm923_vm4, %v1583_v63, 0 }
 0xac0   : > { %2423 = vmatpush3.bf16.msra.mxu1 %v1588_v0 }
 0xac1   : > { %2434 = vmatprep.subr.bf16.mxu1 %v2650_v17 }
 0xac4   : > { %v2581_v1 = vpop.eup %2580 }
 0xac5   : > { %v1578_v4 = vmul.f32 %v2581_v1, %v2577_v60  ;;  %v2539_v60 = vld [vmem:[%s2792_s20] sm:$0xff]  }
 0xac7   : > { %v1580_v5 = vpack.c.bf16 %v1578_v4, %v1578_v4  ;;  %v2255_v4 = vld [vmem:[%s637_s19] ss:$0 sm:$0xff] }
 0xac8   : > { %v2583_v45 = vpop.eup %2582 }
 0xac9   : > { %2425 = vmatmul.mubr.msk.bf16.vlgmr.msra.gmra.mxu1 %vm797_vm3, %v1580_v5  ;;  %v1579_v49 = vmul.f32 %v2583_v45, %v2579_v38 }
 0xaca   : > { %2438 = vmatprep.mubr.msk.bf16.mxu1 %vm2651_vm2, %v2650_v17  ;;  %2435 = vmatpush3.bf16.msra.mxu1 %v2536_v6 }
 0xacb   : > { %v1581_v14 = vpack.c.bf16 %v1579_v49, %v1579_v49  ;;  %2436 = vmatprep.subr.bf16.mxu1 %v2650_v17 }
 0xacd   : > { %2431 = vmatmul.mubr.msk.bf16.vlgmr.msra.gmra.mxu0 %vm797_vm3, %v1581_v14  ;;  %v2256_v14 = vld [vmem:[%s640_s18] ss:$0 sm:$0xff] }
 0xace   : > { %2446 = vmatprep.mubr.msk.bf16.mxu0 %vm2651_vm2, %v2650_v17  ;;  %2437 = vmatpush3.bf16.msra.mxu1 %v2537_v59 }
 0xacf   : > { %2450 = vmatprep.subr.bf16.mxu1 %v2650_v17  ;;  %2443 = vmatpush3.bf16.msra.mxu0 %v2538_v15 }
 0xad0   : > { %2444 = vmatprep.subr.bf16.mxu0 %v2650_v17 }
 0xad3   : > { %2445 = vmatpush3.bf16.msra.mxu0 %v2539_v60 }
 0xb89   : > { %v1624_v7 = vpop.f32.mrf.mxu1 }
 0xb8b   : > { %v2426_v8 = vpop.f32.mrf.mxu1 }
 0xb8d   : > { %v1627_v9 = vpop.f32.mrf.mxu1  ;;  %v1672_v10 = vpop.f32.mrf.mxu0 }
 0xb8e   : > { %v2529_v11 = vpack.i.bf16 %v1672_v10, %v1624_v7  ;;  %v2540_v9 = vld [vmem:[%s2806_s16 + $0x38] sm:$0xff]   ;;  %v2541_v10 = vld [vmem:[%s2806_s16 + $0x30] sm:$0xff]  }
 0xb8f   : > { %v2427_v12 = vpop.f32.mrf.mxu1  ;;  %v2432_v13 = vpop.f32.mrf.mxu0 }
 0xb90   : > { %2530 = vrot.lane.b32.xlu0 %v2529_v11, %s2666_s15  ;;  %v2542_v11 = vld [vmem:[%s2806_s16 + $0x28] sm:$0xff]   ;;  %v2543_v12 = vld [vmem:[%s2806_s16 + $0x20] sm:$0xff]   ;;  %v2544_v13 = vld [vmem:[%s2806_s16 + $0x18] sm:$0xff]  }
 0xb91   : > { %v1675_v16 = vpop.f32.mrf.mxu0 }
 0xb92   : > { %v2545_v16 = vld [vmem:[%s2806_s16 + $0x10] sm:$0xff]  }
 0xb93   : > { %v2433_v18 = vpop.f32.mrf.mxu0 }
 0xb94   : > { %v2546_v18 = vld [vmem:[%s2806_s16 + $0x8] sm:$0xff]  }
 0xc02   : > { %v2531_v24 = vpop.permute.xlu0 %2530 }
 0xc03   : > { %v2533_v27 = vunpack.i.h.bf16 %v2531_v24  ;;  %v2532_v28 = vunpack.i.l.bf16 %v2531_v24 }
 0xc05   : > { %v1709_v31 = vsel %vm1707_vm6, %v1706_v30, %v2533_v27  ;;  %v1708_v32 = vsel %vm1707_vm6, %v1705_v29, %v2532_v28 }
 0xc06   : > { %v1710_v33 = vpack.c.bf16 %v1709_v31, %v1708_v32 }
 0xc08   : > { %2439 = vmatmul.mubr.msk.bf16.vlgmr.msra.gmra.mxu1 %vm656_vm1, %v1710_v33 }
 0xc09   : > { %2466 = vmatprep.mubr.msk.bf16.mxu1 %vm2651_vm2, %v2650_v17  ;;  %2451 = vmatpush3.bf16.msra.mxu1 %v2540_v9 }
 0xc0a   : > { %2452 = vmatprep.subr.bf16.mxu1 %v2650_v17 }
 0xc0d   : > { %2453 = vmatpush3.bf16.msra.mxu1 %v2541_v10 }
 0xc0e   : > { %2454 = vmatprep.subr.bf16.mxu1 %v2650_v17 }
 0xc11   : > { %2455 = vmatpush3.bf16.msra.mxu1 %v2542_v11 }
 0xc12   : > { %2456 = vmatprep.subr.bf16.mxu1 %v2650_v17 }
 0xc15   : > { %2457 = vmatpush3.bf16.msra.mxu1 %v2543_v12 }
 0xc16   : > { %2458 = vmatprep.subr.bf16.mxu1 %v2650_v17 }
 0xc19   : > { %2459 = vmatpush3.bf16.msra.mxu1 %v2544_v13 }
 0xc1a   : > { %2460 = vmatprep.subr.bf16.mxu1 %v2650_v17 }
 0xc1d   : > { %2461 = vmatpush3.bf16.msra.mxu1 %v2545_v16 }
 0xc1e   : > { %2462 = vmatprep.subr.bf16.mxu1 %v2650_v17 }
 0xc21   : > { %2463 = vmatpush3.bf16.msra.mxu1 %v2546_v18 }
 0xc22   : > { %2464 = vmatprep.subr.bf16.mxu1 %v2650_v17 }
 0xc25   : > { %2465 = vmatpush3.bf16.msra.mxu1 %v2547_v19 }
 0xcc8   : > { %v1771_v34 = vpop.f32.mrf.mxu1 }
 0xcc9   : > { %v1772_v36 = vadd.f32 %v2251_v48, %v1771_v34 }
 0xcca   : > { %v2440_v44 = vpop.f32.mrf.mxu1 }
 0xccb   : > { %v3031_v37 = vadd.f32 %v1772_v36, %v2822_v2 }
 0xccc   : > { %v1774_v40 = vpop.f32.mrf.mxu1 }
 0xccd   : > { %v1775_v41 = vadd.f32 %v2251_v48, %v1774_v40  ;;  %v1782_v42 = vsel %vm656_vm1, %v3031_v37, 0.0  ;;  %v2263_v40 = vld [vmem:[%s634_s26] ss:$0 sm:$0xff]  ;;  %s2598_s26 = scalar_lea.vmem %s2037_s21, 256 }
 0xcce   : > { %1783 = vadd.xlane.f32.xlu1 %v1782_v42  ;;  %v2441_v43 = vpop.f32.mrf.mxu1  ;;  %p2599_p7 = scmp.ne.s32.totalorder %s2037_s21, %s2598_s26  ;;  %p2606_p11 = scmp.lt.s32.totalorder %s2598_s26, %s2598_s26 }
 0xccf   : > { %v3036_v46 = vadd.f32 %v1775_v41, %v2824_v3 }
 0xcd0   : > { %p2600_p8 = pnand %p2599_p7, %p3088_p6  ;;  %p2607_p12 = por %p2606_p11, %p2605_p10 }
 0xcd1   : > { %v1785_v47 = vsel %vm656_vm1, %v3036_v46, 0.0 }
 0xcd2   : > { %1786 = vadd.xlane.f32.xlu0 %v1785_v47  ;;  %p2601_p9 = pneg %p2600_p8 }
 0xcd4   : > { %p2608_p13 = pnand %p2607_p12, %p2601_p9 }
 0xd57   : > { %v1784_v50 = vpop.xlane.xlu1 %1783 }
 0xd58   : > { %v1788_v51 = vmul.f32 0.03125, %v1784_v50 }
 0xd5a   : > { %v1790_v2 = vsub.f32 %v3031_v37, %v1788_v51  ;;  %v2596_v51 = vld [vmem:[#allocation2] sm:$0xff] }
 0xd5b   : > { %v1787_v52 = vpop.xlane.xlu0 %1786 }
 0xd5c   : > { %v1789_v53 = vmul.f32 0.03125, %v1787_v52  ;;  %v1792_v54 = vmul.f32 %v1790_v2, %v1790_v2 }
 0xd5e   : > { %v1791_v55 = vsub.f32 %v3036_v46, %v1789_v53  ;;  %v1794_v57 = vsel %vm656_vm1, %v1792_v54, 0.0 }
 0xd5f   : > { %1795 = vadd.xlane.f32.xlu0 %v1794_v57 }
 0xd60   : > { %v1793_v58 = vmul.f32 %v1791_v55, %v1791_v55 }
 0xd62   : > { %v1797_v3 = vsel %vm656_vm1, %v1793_v58, 0.0 }
 0xd63   : > { %1798 = vadd.xlane.f32.xlu0 %v1797_v3 }
 0xde8   : > { %v1796_v35 = vpop.xlane.xlu0 %1795 }
 0xde9   : > { %v1800_v38 = vmul.f32 0.03125, %v1796_v35 }
 0xdeb   : > { %v1802_v39 = vadd.f32 1e-05, %v1800_v38 }
 0xdec   : > { %v1799_v61 = vpop.xlane.xlu0 %1798 }
 0xded   : > { %2584 = vrsqrt.f32 %v1802_v39  ;;  %v1801_v62 = vmul.f32 0.03125, %v1799_v61 }
 0xdef   : > { %v1803_v63 = vadd.f32 1e-05, %v1801_v62 }
 0xdf1   : > { %2586 = vrsqrt.f32 %v1803_v63 }
 0xdfa   : > { %v2585_v0 = vpop.eup %2584 }
 0xdfb   : > { %v1806_v1 = vmul.f32 %v2585_v0, %v1790_v2 }
 0xdfd   : > { %v1814_v49 = vmul.f32 %v2255_v4, %v1806_v1 }
 0xdfe   : > { %v2587_v5 = vpop.eup %2586 }
 0xdff   : > { %v1807_v45 = vmul.f32 %v2587_v5, %v1791_v55  ;;  %v1822_v59 = vadd.f32 %v2256_v14, %v1814_v49  ;;  %v2597_v55 = vld [vmem:[#allocation2 + $0x8] sm:$0xff] }
 0xe01   : > { %v1815_v6 = vmul.f32 %v2255_v4, %v1807_v45 }
 0xe03   : > { %v1823_v7 = vadd.f32 %v2256_v14, %v1815_v6 }
 0xe05   : > { %v1824_v8 = vpack.c.bf16 %v1823_v7, %v1822_v59 }
 0xe07   : > { %2447 = vmatmul.mubr.msk.bf16.vlgmr.msra.gmra.mxu0 %vm656_vm1, %v1824_v8 }
 0xec7   : > { %v1885_v20 = vpop.f32.mrf.mxu0 }
 0xec8   : > { %v1886_v21 = vadd.f32 %v2257_v56, %v1885_v20 }
 0xec9   : > { %v2448_v22 = vpop.f32.mrf.mxu0 }
 0xeca   : > { %v2261_v23 = vmul.f32 -1.702, %v1886_v21 }
 0xecb   : > { %v1888_v24 = vpop.f32.mrf.mxu0 }
 0xecc   : > { %v1896_v25 = vmul.f32 1.442695, %v2261_v23  ;;  %v1889_v26 = vadd.f32 %v2257_v56, %v1888_v24 }
 0xecd   : > { %v2449_v27 = vpop.f32.mrf.mxu0 }
 0xece   : > { %2588 = vpow2.f32 %v1896_v25  ;;  %v2262_v28 = vmul.f32 -1.702, %v1889_v26 }
 0xed0   : > { %v1898_v29 = vmul.f32 1.442695, %v2262_v28 }
 0xed2   : > { %2590 = vpow2.f32 %v1898_v29 }
 0xedb   : > { %v2589_v17 = vpop.eup %2588 }
 0xedc   : > { %v1900_v30 = vadd.f32 1.0, %v2589_v17 }
 0xede   : > { %2592 = vrcp.f32 %v1900_v30 }
 0xedf   : > { %v2591_v31 = vpop.eup %2590 }
 0xee0   : > { %v1901_v32 = vadd.f32 1.0, %v2591_v31 }
 0xee2   : > { %2594 = vrcp.f32 %v1901_v32 }
 0xeeb   : > { %v2593_v33 = vpop.eup %2592 }
 0xeec   : > { %v1906_v34 = vmul.f32 %v2593_v33, %v1886_v21 }
 0xeef   : > { %v2595_v48 = vpop.eup %2594 }
 0xef0   : > { %v1907_v36 = vmul.f32 %v2595_v48, %v1889_v26 }
 0xef2   : > { %v1908_v44 = vpack.c.bf16 %v1907_v36, %v1906_v34 }
 0xef4   : > { %2467 = vmatmul.mubr.bf16.vlgmr.msra.gmra.mxu1 %v1908_v44 }
 0xfb4   : > { %v2014_v41 = vpop.f32.mrf.mxu1 }
 0xfb5   : > { %v2015_v42 = vadd.f32 %v2263_v40, %v2014_v41 }
 0xfb6   : > { %v2468_v43 = vpop.f32.mrf.mxu1 }
 0xfb7   : > { %v2021_v47 = vadd.f32 %v2015_v42, %v3031_v37 }
 0xfb8   : > { %v2017_v50 = vpop.f32.mrf.mxu1 }
 0xfb9   : > { %v2023_v2 = vadd.f32 %v2596_v51, %v2021_v47  ;;  %v2018_v52 = vadd.f32 %v2263_v40, %v2017_v50 }
 0xfba   : > { %v2469_v53 = vpop.f32.mrf.mxu1 }
 0xfbb   : > { %2025 = vst.msk [vmem:[#allocation2] sm:$0xff] %vm656_vm1, %v2023_v2  ;;  %v2022_v54 = vadd.f32 %v2018_v52, %v3036_v46 }
 0xfbd   : > { %v2024_v57 = vadd.f32 %v2597_v55, %v2022_v54 }
 0xfbf   : > { %2026 = vst.msk [vmem:[#allocation2 + $0x8] sm:$0xff] %vm656_vm1, %v2024_v57 }
 0xfc0   : > { %2611 = shalt.err (!%p2608_p13)
}
 0xfc1   : > { %s2668_s1 = smov 128   ;;  %s3149_s24 = sld [smem:[#allocation12_spill]] }
 0xfc7   : > { %2471 = dma.vmem_to_hbm [thread:$0]  (%p3088_p6), %s2037_s21, 256, %s3149_s24, [#allocation3], %s2668_s1, %s2668_s1, %s2664_s17  }
 0xfc8   : > { %2635 = dma.done.wait (%p3088_p6), [#allocation3], 256  }
 0xfc9   : > { %2637 = vsyncadd (%p3088_p6), [#allocation3], 4294967040 }
 0xfca PF: > { %s3150_s22 = sld [smem:[#allocation6_spill]] }
 0xfcb   : > { %s3151_s25 = sld [smem:[#allocation5_spill]] }
 0xfcc   : > { %s3152_s26 = sld [smem:[#allocation7_spill]] }
 0xfd0   : > { %s24_s27 = sadd.s32 1, %s3150_s22  }
 0xfd1   : > { %p21_p0 = scmp.ge.s32.totalorder %s24_s27, 4  }
 0xfd3   :  { %23 = sbr.rel (!%p21_p0) target bundleno = 7 (0x7), region = 140 }
 0xfd8   :  { %2052 = vsyncpa [#allocation3], 1 }
 0xfd9   :  { %2054 = vsyncpa [#allocation3 + $0x1], 1 }

</bundles_post_ra>
